<compile_context>
chip_gen: v6e
topology: v6e:2x2x1
jax: 0.10.0
libtpu: 0.0.40
codegen_flags: <defaults>
</compile_context>

<pallas_src>
import functools
from typing import NamedTuple

import numpy as np

import jax
import jax.numpy as jnp
from jax.experimental import pallas as pl
from jax.experimental.pallas import tpu as pltpu

BN_EPS = 1e-5


# ----------------------------- activation layout -----------------------------

class Layout(NamedTuple):
    """Flat, channel-major activation layout.

    A feature map (N, C, H, W) is stored as (C, mtot) bf16: each image gets a
    1-pixel zero ring (the conv padding), is flattened row-major onto the lane
    axis, surrounded by a `g`-lane zero guard (>= the largest 3x3 shift) so
    pltpu.roll never brings valid data into valid positions, and rounded up to
    a multiple of 128 lanes so every vector store is unmasked.
    """
    n: int
    h: int
    w: int
    hp: int
    wp: int
    mp: int
    g: int
    mtot: int


def make_layout(n, h, w):
    hp, wp = h + 2, w + 2
    mp = n * hp * wp
    g = wp + 1                                   # >= max |shift| of a 3x3 conv
    mtot = -(-(mp + 2 * g) // 128) * 128
    return Layout(n, h, w, hp, wp, mp, g, mtot)


_MASK_CACHE = {}


def get_mask(lay: Layout):
    """(1, mtot) f32 mask: 1.0 on valid interior pixels, 0 on pad ring/guard."""
    if lay not in _MASK_CACHE:
        m = np.zeros((1, lay.mtot), np.float32)
        for n in range(lay.n):
            base = lay.g + n * lay.hp * lay.wp
            for hh in range(1, lay.h + 1):
                s = base + hh * lay.wp + 1
                m[0, s:s + lay.w] = 1.0
        _MASK_CACHE[lay] = jnp.asarray(m)
    return _MASK_CACHE[lay]


def to_flat(x4, lay: Layout):
    """(C, N, H, W) -> (C, mtot) bf16 in the flat padded layout."""
    c = x4.shape[0]
    xp = jnp.pad(x4, ((0, 0), (0, 0), (1, 1), (1, 1)))
    flat = xp.reshape(c, lay.mp)
    flat = jnp.pad(flat, ((0, 0), (lay.g, lay.mtot - lay.mp - lay.g)))
    return flat.astype(jnp.bfloat16)


def flat_to_4d(xflat, lay: Layout):
    """(C, mtot) -> (C, N, H, W) interior."""
    c = xflat.shape[0]
    x = xflat[:, lay.g:lay.g + lay.mp].reshape(c, lay.n, lay.hp, lay.wp)
    return x[:, :, 1:1 + lay.h, 1:1 + lay.w]


def im2col_flat(x4, lout: Layout, k, stride):
    """Patch extraction for strided convs: (C,N,H,W) -> (k*k*C, lout.mtot).

    Only used for the (few, small) stride-2 convs; stride-1 convs never touch
    this path (they shift in-kernel)."""
    c = x4.shape[0]
    pad = k // 2
    xp = jnp.pad(x4, ((0, 0), (0, 0), (pad, pad), (pad, pad)))
    slabs = []
    for kh in range(k):
        for kw in range(k):
            slabs.append(xp[:, :, kh:kh + stride * (lout.h - 1) + 1:stride,
                                  kw:kw + stride * (lout.w - 1) + 1:stride])
    cols = jnp.concatenate(slabs, axis=0)                    # (k*k*C, N, Ho, Wo)
    cols = jnp.pad(cols, ((0, 0), (0, 0), (1, 1), (1, 1)))   # output pad ring
    flat = cols.reshape(k * k * c, lout.mp)
    flat = jnp.pad(flat, ((0, 0), (lout.g, lout.mtot - lout.mp - lout.g)))
    return flat.astype(jnp.bfloat16)


def upsample_matrix(lsrc: Layout, ldst: Layout):
    """(mtot_src, mtot_dst) bf16 matrix implementing UpsamplingBilinear2d
    (align_corners=True) between the two flat padded layouts.  Rows for pad /
    guard source lanes and columns for pad / guard destination lanes are 0."""
    def pairs(insz, outsz):
        if insz == 1:
            z = np.zeros(outsz, np.int64)
            return z, z, np.ones(outsz), np.zeros(outsz)
        coords = np.arange(outsz) * (insz - 1) / (outsz - 1)
        lo = np.clip(np.floor(coords).astype(np.int64), 0, insz - 1)
        hi = np.clip(lo + 1, 0, insz - 1)
        frac = coords - lo
        return lo, hi, 1.0 - frac, frac

    hlo, hhi, hwl, hwh = pairs(lsrc.h, ldst.h)
    wlo, whi, wwl, wwh = pairs(lsrc.w, ldst.w)
    u = np.zeros((lsrc.mtot, ldst.mtot), np.float32)
    for n in range(ldst.n):
        sb = lsrc.g + n * lsrc.hp * lsrc.wp
        db = ldst.g + n * ldst.hp * ldst.wp
        for ho in range(ldst.h):
            for wo in range(ldst.w):
                col = db + (ho + 1) * ldst.wp + (wo + 1)
                for hs, fh in ((hlo[ho], hwl[ho]), (hhi[ho], hwh[ho])):
                    for ws, fw in ((wlo[wo], wwl[wo]), (whi[wo], wwh[wo])):
                        row = sb + (int(hs) + 1) * lsrc.wp + (int(ws) + 1)
                        u[row, col] += float(fh) * float(fw)
    return jnp.asarray(u, dtype=jnp.bfloat16)


# ------------------------------ Pallas kernel --------------------------------

def _fused_conv_kernel(*refs, shifts, relu, has_up, has_res):
    """Fused Conv(+foldedBN)+bias(+upsample)(+residual)(+ReLU) kernel.

    x:(K, Mtot_in) bf16, w:(n_k, Cout, K) bf16, bias:(Cout,1) f32,
    mask:(1, Mtot_out) f32, [u:(Mtot_in, Mtot_out) bf16], [res:(Cout, Mtot_out)]
    -> out:(Cout, Mtot_out) bf16 (lane-dense, Mtot multiple of 128)."""
    it = list(refs)
    x_ref = it.pop(0)
    w_ref = it.pop(0)
    b_ref = it.pop(0)
    m_ref = it.pop(0)
    u_ref = it.pop(0) if has_up else None
    r_ref = it.pop(0) if has_res else None
    o_ref = it.pop(0)

    x = x_ref[...]                                   # (K, Mtot_in) bf16
    mtot_in = x.shape[1]
    acc = None
    for kidx, d in shifts:                           # in-kernel shift-GEMM conv
        xs = x if d == 0 else pltpu.roll(x, (-d) % mtot_in, axis=1)
        part = jnp.dot(w_ref[kidx], xs, preferred_element_type=jnp.float32)
        acc = part if acc is None else acc + part
    y = acc + b_ref[...]                             # f32 epilogue
    if has_up:                                       # bilinear upsample as GEMM
        y = jnp.dot(y.astype(jnp.bfloat16), u_ref[...],
                    preferred_element_type=jnp.float32)
    if has_res:                                      # fused residual / fuse add
        y = y + r_ref[...].astype(jnp.float32)
    if relu:
        y = jnp.maximum(y, 0.0)
    y = y * m_ref[...]                               # re-zero pad ring + guard
    o_ref[...] = y.astype(o_ref.dtype)


def fused_conv(x, wk, bias, mask, *, shifts, relu, u=None, res=None):
    cout = wk.shape[1]
    mtot_out = mask.shape[1]
    args = [x, wk, bias, mask]
    if u is not None:
        args.append(u)
    if res is not None:
        args.append(res)
    vspec = pl.BlockSpec(memory_space=pltpu.MemorySpace.VMEM)
    kernel = functools.partial(
        _fused_conv_kernel, shifts=tuple(shifts), relu=bool(relu),
        has_up=u is not None, has_res=res is not None)
    return pl.pallas_call(
        kernel,
        out_shape=jax.ShapeDtypeStruct((cout, mtot_out), jnp.bfloat16),
        in_specs=[vspec] * len(args),
        out_specs=vspec,
    )(*args)


# --------------------------- per-config executors -----------------------------

@functools.lru_cache(maxsize=None)
def _conv_executor(k, stride, relu, lin: Layout, lout: Layout):
    """One jitted callable per static conv config (reused across call sites):
    it fuses the (stride-2 only) patch-extraction glue with the Pallas call."""
    pad = k // 2
    if stride == 1:
        shifts = tuple((kh * k + kw, (kh - pad) * lin.wp + (kw - pad))
                       for kh in range(k) for kw in range(k))
    else:
        shifts = ((0, 0),)                           # pre-gathered (im2col) mode
    mask = get_mask(lout)

    def run(x, wk, bias, u, res):
        if stride == 1:
            xin = x
        else:
            xin = im2col_flat(flat_to_4d(x, lin), lout, k, stride)
        return fused_conv(xin, wk, bias, mask, shifts=shifts, relu=relu,
                          u=u, res=res)

    return jax.jit(run)


def apply_conv(x, p, lin, lout, *, relu, res=None, u=None):
    if p['stride'] == 1 and u is None:
        assert lin == lout
    fn = _conv_executor(p['k'], p['stride'], relu, lin, lout)
    return fn(x, p['wk'], p['bias'], u, res)


# ------------------------------ Parameters ------------------------------------

class KeyGen:
    def __init__(self, key):
        self.key = key
        self.i = 0

    def __call__(self):
        self.i += 1
        return jax.random.fold_in(self.key, self.i)


def conv_bn_params(key, cin, cout, k, stride=1):
    # Conv init: normal(0, sqrt(1/fan_out)), fan_out = k*k*cout (groups=1).
    std = (1.0 / (k * k * cout)) ** 0.5
    w = std * jax.random.normal(key, (k, k, cin, cout), jnp.float32)  # HWIO
    # BN defaults (gamma=1, beta=0, mean=0, var=1), inference mode.
    scale = jnp.ones((cout,), jnp.float32) / jnp.sqrt(1.0 + BN_EPS)
    bias = jnp.zeros((cout,), jnp.float32)
    ws = w * scale[None, None, None, :]           # fold BN scale into weights
    if stride == 1:                               # (k*k, Cout, Cin) for shifts
        wk = jnp.transpose(ws, (0, 1, 3, 2)).reshape(k * k, cout, cin)
    else:                                         # (1, Cout, k*k*Cin) for im2col
        wk = jnp.transpose(ws, (3, 0, 1, 2)).reshape(1, cout, k * k * cin)
    return dict(wk=wk.astype(jnp.bfloat16),
                bias=bias.reshape(cout, 1),
                k=k, stride=stride)


def make_hrmodule_params(kg, n_branches, block, n_channels, lays):
    branches = []
    for i in range(n_branches):
        ch = n_channels[i]
        if block == 'bottleneck':
            blocks = [dict(conv1=conv_bn_params(kg(), ch, ch, 1),
                           conv2=conv_bn_params(kg(), ch, ch, 3),
                           conv3=conv_bn_params(kg(), ch, 4 * ch, 1),
                           downsample=conv_bn_params(kg(), ch, 4 * ch, 1))]
            for _ in range(3):
                blocks.append(dict(conv1=conv_bn_params(kg(), 4 * ch, ch, 1),
                                   conv2=conv_bn_params(kg(), ch, ch, 3),
                                   conv3=conv_bn_params(kg(), ch, 4 * ch, 1),
                                   downsample=None))
        else:
            blocks = [dict(conv1=conv_bn_params(kg(), ch, ch, 3),
                           conv2=conv_bn_params(kg(), ch, ch, 3))
                      for _ in range(4)]
        branches.append(blocks)

    fuse = []
    for i in range(n_branches):
        row = []
        for j in range(n_branches):
            if i < j:
                row.append(dict(kind='up',
                                conv=conv_bn_params(kg(), n_channels[j],
                                                    n_channels[i], 1),
                                U=upsample_matrix(lays[j], lays[i])))
            elif i == j:
                row.append(dict(kind='id'))
            else:
                convs = [conv_bn_params(kg(), n_channels[j], n_channels[j], 3,
                                        stride=2)
                         for _ in range(i - j - 1)]
                convs.append(conv_bn_params(kg(), n_channels[j], n_channels[i],
                                            3, stride=2))
                row.append(dict(kind='down', convs=convs))
        fuse.append(row)
    return dict(block=block, n_branches=n_branches, branches=branches, fuse=fuse)


def make_hrnet_params(key, width=18, batch=2, in_hw=64):
    kg = KeyGen(key)
    stem_in = make_layout(batch, in_hw, in_hw)
    stem_mid = make_layout(batch, in_hw // 2, in_hw // 2)
    blays = [make_layout(batch, in_hw // (4 * 2 ** i), in_hw // (4 * 2 ** i))
             for i in range(4)]
    p = {'layouts': dict(stem_in=stem_in, stem_mid=stem_mid, branches=blays)}
    p['conv1'] = conv_bn_params(kg(), 3, 64, 3, stride=2)
    p['conv2'] = conv_bn_params(kg(), 64, 64, 3, stride=2)
    p['stage1'] = [make_hrmodule_params(kg, 1, 'bottleneck', [64], blays[:1])]
    p['trans1'] = [conv_bn_params(kg(), 256, width, 3, stride=1),
                   conv_bn_params(kg(), 256, 2 * width, 3, stride=2)]
    p['stage2'] = [make_hrmodule_params(kg, 2, 'basic', [width, 2 * width],
                                        blays[:2])]
    p['trans2'] = [None, None,
                   conv_bn_params(kg(), 2 * width, 4 * width, 3, stride=2)]
    p['stage3'] = [make_hrmodule_params(kg, 3, 'basic',
                                        [width, 2 * width, 4 * width], blays[:3])
                   for _ in range(4)]
    p['trans3'] = [None, None, None,
                   conv_bn_params(kg(), 4 * width, 8 * width, 3, stride=2)]
    p['stage4'] = [make_hrmodule_params(kg, 4, 'basic',
                                        [width, 2 * width, 4 * width, 8 * width],
                                        blays[:4])
                   for _ in range(3)]
    return p


# ------------------------------ Forward pass ----------------------------------

def basic_block_fwd(x, p, lay):
    h = apply_conv(x, p['conv1'], lay, lay, relu=True)
    # conv2 + BN + residual add + ReLU fused in one kernel.
    return apply_conv(h, p['conv2'], lay, lay, relu=True, res=x)


def bottleneck_fwd(x, p, lay):
    h = apply_conv(x, p['conv1'], lay, lay, relu=True)     # 1x1
    h = apply_conv(h, p['conv2'], lay, lay, relu=True)     # 3x3
    if p['downsample'] is not None:
        idn = apply_conv(x, p['downsample'], lay, lay, relu=False)
    else:
        idn = x
    # 1x1 -> 4c, + identity, ReLU fused.
    return apply_conv(h, p['conv3'], lay, lay, relu=True, res=idn)


def hrmodule_fwd(xs, p, lays):
    n = p['n_branches']
    xs = list(xs)
    blk_fn = bottleneck_fwd if p['block'] == 'bottleneck' else basic_block_fwd
    for i in range(n):
        h = xs[i]
        for blk in p['branches'][i]:
            h = blk_fn(h, blk, lays[i])
        xs[i] = h

    outs = []
    for i in range(n):
        acc = xs[i]                                 # identity fuse edge (j == i)
        for j in range(n):
            if j == i:
                continue
            f = p['fuse'][i][j]
            if f['kind'] == 'up':
                # 1x1 conv + BN + bilinear upsample + add-into-acc, one kernel.
                acc = apply_conv(xs[j], f['conv'], lays[j], lays[i],
                                 relu=False, res=acc, u=f['U'])
            else:                                   # 'down': chain of s2 convs
                y = xs[j]
                convs = f['convs']
                for t, cp in enumerate(convs):
                    last = t == len(convs) - 1
                    y = apply_conv(y, cp, lays[j + t], lays[j + t + 1],
                                   relu=not last, res=acc if last else None)
                acc = y
        # NOTE: no ReLU after the fuse sum, matching the reference module.
        outs.append(acc)
    return outs


def hrnet_forward(x_nchw, P):
    lays = P['layouts']
    blays = lays['branches']
    x4 = jnp.transpose(x_nchw, (1, 0, 2, 3)).astype(jnp.float32)   # (C,N,H,W)
    x = to_flat(x4, lays['stem_in'])
    x = apply_conv(x, P['conv1'], lays['stem_in'], lays['stem_mid'], relu=True)
    x = apply_conv(x, P['conv2'], lays['stem_mid'], blays[0], relu=True)
    xs = [x]
    for num in range(1, 5):
        for mod in P[f'stage{num}']:
            xs = hrmodule_fwd(xs, mod, blays[:len(xs)])
        if num < 4:
            trans = P[f'trans{num}']
            ys = []
            for i, t in enumerate(trans):
                src_idx = min(i, len(xs) - 1)
                src = xs[src_idx]
                if t is None:
                    ys.append(src)
                else:
                    ys.append(apply_conv(src, t, blays[src_idx], blays[i],
                                         relu=True))
            xs = ys
    # Unpack the flat layout back to PyTorch-style NCHW outputs.
    outs = []
    for xf, lay in zip(xs, blays[:len(xs)]):
        x4o = flat_to_4d(xf, lay).astype(jnp.float32)              # (C,N,H,W)
        outs.append(jnp.transpose(x4o, (1, 0, 2, 3)))              # (N,C,H,W)
    return outs


# ---------------------------------- Main ---------------------------------------

if __name__ == "__main__":
    root = jax.random.PRNGKey(0)
    params = make_hrnet_params(jax.random.fold_in(root, 1),
                               width=18, batch=2, in_hw=64)
    x = jax.random.normal(jax.random.fold_in(root, 2), (2, 3, 64, 64),
                          jnp.float32)

    outs = hrnet_forward(x, params)
    for o in outs:
        o.block_until_ready()

    expected = [(2, 18, 16, 16), (2, 36, 8, 8), (2, 72, 4, 4), (2, 144, 2, 2)]
    for o, e in zip(outs, expected):
        assert o.shape == e, (o.shape, e)
        assert bool(jnp.all(jnp.isfinite(o)))
    print("KERNEL_OK")
</pallas_src>

<mosaic_0001>
module attributes {stable_mosaic.version = 11 : i64} {
  func.func @_fused_conv_kernel(%arg0: memref<27x2432xbf16, #tpu.memory_space<vmem>>, %arg1: memref<1x64x27xbf16, #tpu.memory_space<vmem>>, %arg2: memref<64x1xf32, #tpu.memory_space<vmem>>, %arg3: memref<1x2432xf32, #tpu.memory_space<vmem>>, %arg4: memref<64x2432xbf16, #tpu.memory_space<vmem>>) attributes {dimension_semantics = [], scalar_prefetch = 0 : i64, scratch_operands = 0 : i64, tpu.core_type = #tpu.core_type<tc>} {
    %c0 = arith.constant 0 : index
    %c0_0 = arith.constant 0 : index
    %0 = vector.load %arg0[%c0, %c0_0] : memref<27x2432xbf16, #tpu.memory_space<vmem>>, vector<27x2432xbf16>
    %c0_1 = arith.constant 0 : index
    %c0_2 = arith.constant 0 : index
    %c0_3 = arith.constant 0 : index
    %1 = vector.load %arg1[%c0_1, %c0_2, %c0_3] : memref<1x64x27xbf16, #tpu.memory_space<vmem>>, vector<1x64x27xbf16>
    %2 = vector.shape_cast %1 : vector<1x64x27xbf16> to vector<64x27xbf16>
    %cst = arith.constant dense<0.000000e+00> : vector<64x2432xf32>
    %3 = tpu.matmul %2, %0, %cst {dimension_numbers = #tpu.dot_dimension_numbers<[1], [0], [0], [1], [0, 0, 1, 1], [], []>} : vector<64x27xbf16>, vector<27x2432xbf16>, vector<64x2432xf32> -> vector<64x2432xf32>
    %c0_4 = arith.constant 0 : index
    %c0_5 = arith.constant 0 : index
    %4 = vector.load %arg2[%c0_4, %c0_5] : memref<64x1xf32, #tpu.memory_space<vmem>>, vector<64x1xf32>
    %5 = vector.broadcast %4 : vector<64x1xf32> to vector<64x2432xf32>
    %6 = arith.addf %3, %5 : vector<64x2432xf32>
    %cst_6 = arith.constant 0.000000e+00 : f32
    %7 = vector.broadcast %cst_6 : f32 to vector<64x2432xf32>
    %8 = arith.maximumf %6, %7 : vector<64x2432xf32>
    %c0_7 = arith.constant 0 : index
    %c0_8 = arith.constant 0 : index
    %9 = vector.load %arg3[%c0_7, %c0_8] : memref<1x2432xf32, #tpu.memory_space<vmem>>, vector<1x2432xf32>
    %10 = vector.broadcast %9 : vector<1x2432xf32> to vector<64x2432xf32>
    %11 = arith.mulf %8, %10 : vector<64x2432xf32>
    %12 = arith.truncf %11 : vector<64x2432xf32> to vector<64x2432xbf16>
    %c0_9 = arith.constant 0 : index
    %c0_10 = arith.constant 0 : index
    %13 = vector.load %arg4[%c0_9, %c0_10] : memref<64x2432xbf16, #tpu.memory_space<vmem>>, vector<64x2432xbf16>
    tpu.vector_store %arg4[%c0_9, %c0_10], %12 {strides = array<i32>} : memref<64x2432xbf16, #tpu.memory_space<vmem>>, vector<64x2432xbf16>,
    return
  }
}

</mosaic_0001>

<bundles_post_ra>
// kernel: run.1
= control target key start
LH: loop header
LB: loop body
LE: loop exit
PB: predicated region body
PF: predicated region fallthrough
CT: control target
= control target key end

     0   :  { %vm321_vm0 = vcmask 1044480   ;;  %vm322_vm1 = vcmask 1045504   ;;  %v2422_v2 = vmov 65535   ;;  %v2423_v5 = vmov 0   ;;  %s3189_s0 = inlined_call_operand.vmem [shape: bf16[27,2432], index: 0, kind: input, shape index: {}]   ;;  %s3190_s1 = inlined_call_operand.vmem [shape: bf16[1,64,27], index: 1, kind: input, shape index: {}]   ;;  %s3191_s2 = inlined_call_operand.vmem [shape: f32[64,1], index: 2, kind: input, shape index: {}]   ;;  %s3192_s3 = inlined_call_operand.vmem [shape: f32[1,2432], index: 3, kind: input, shape index: {}]   ;;  %s3193_s4 = inlined_call_operand.hbm [shape: bf16[64,2432], index: 4, kind: output, shape index: {}]  }
   0x1   :  { %v2340_v0 = vld [vmem:[%s3189_s0 + $0x9c] ss:$76 sps:$4 sm:$0x3f]   ;;  %v2342_v1 = vld [vmem:[%s3189_s0 + $0x98] ss:$76 sps:$4 sm:$0x3f]   ;;  %414 = vmatprep.mubr.bf16.mxu0 %v2423_v5  ;;  %444 = vmatprep.mubr.bf16.mxu1 %v2423_v5 }
   0x2   :  { %v323_v3 = vsel %vm321_vm0, 4294967295, %v2422_v2  ;;  %v2343_v8 = vld [vmem:[%s3189_s0 + $0x4] ss:$76 sps:$4 sm:$0xff]   ;;  %2338 = vset.pattern.permute.xlu0 %v2423_v5  ;;  %2339 = vset.pattern.permute.xlu1 %v2423_v5  ;;  %v2345_v9 = vld [vmem:[%s3189_s0] ss:$76 sps:$4 sm:$0xff]   ;;  %v2493_v16 = vld [vmem:[%s3190_s1 + $0x18] sm:$0xff]  }
   0x3   :  { %v2458_v4 = vsel %vm322_vm1, %v323_v3, 0  ;;  %v2348_v10 = vld [vmem:[%s3189_s0 + $0xa0] ss:$76 sps:$4 sm:$0x3f]   ;;  %vm308_vm2 = vcmask 220160   ;;  %v69_v35 = vld [vmem:[%s3191_s2 + $0x10] sm:$0xff] }
   0x4   :  { %v329_v6 = vand.u32 %v2340_v0, %v2458_v4  ;;  %v326_v7 = vand.u32 %v2342_v1, %v2458_v4  ;;  %v2350_v11 = vld [vmem:[%s3189_s0 + $0xa4] ss:$76 sps:$4 sm:$0x3f]   ;;  %v2351_v12 = vld [vmem:[%s3189_s0 + $0xa8] ss:$76 sps:$4 sm:$0x3f]   ;;  %v332_v18 = vand.u32 %v2348_v10, %v2458_v4  ;;  %87 = vperm.xlu1 %2339, %v69_v35  }
   0x5   :  { %v335_v13 = vand.u32 %v2350_v11, %v2458_v4  ;;  %v2353_v14 = vld [vmem:[%s3189_s0 + $0xac] ss:$76 sps:$4 sm:$0x3f]   ;;  %v2488_v15 = vld [vmem:[%s3190_s1] sm:$0xff]   ;;  %v338_v19 = vand.u32 %v2351_v12, %v2458_v4  ;;  %v2354_v23 = vld [vmem:[%s3189_s0 + $0x8] ss:$76 sps:$4 sm:$0xff]  }
   0x6   :  { %394 = vmatprep.subr.bf16.mxu0 %v329_v6  ;;  %2329 = vmatprep.subr.bf16.mxu1 %v329_v6  ;;  %v341_v17 = vand.u32 %v2353_v14, %v2458_v4  ;;  %v2356_v20 = vld [vmem:[%s3189_s0 + $0xc] ss:$76 sps:$4 sm:$0xff]   ;;  %v2360_v21 = vld [vmem:[%s3189_s0 + $0xb4] ss:$76 sps:$4 sm:$0x3f]  }
   0x7   :  { %395 = vmatpush1.bf16.msra.mxu0 %v326_v7  ;;  %2331 = vmatpush1.bf16.msra.mxu1 %v326_v7  ;;  %v2363_v22 = vld [vmem:[%s3189_s0 + $0x14] ss:$76 sps:$4 sm:$0xff]   ;;  %v2358_v24 = vld [vmem:[%s3189_s0 + $0xb0] ss:$76 sps:$4 sm:$0x3f]   ;;  %v347_v26 = vand.u32 %v2360_v21, %v2458_v4  ;;  %v2529_v28 = vld [vmem:[%s3190_s1 + $0x8] sm:$0xff]  }
   0x8   :  { %396 = vmatprep.subr.bf16.mxu0 %v2343_v8  ;;  %2330 = vmatprep.subr.bf16.mxu1 %v2343_v8  ;;  %v2361_v25 = vld [vmem:[%s3189_s0 + $0x10] ss:$76 sps:$4 sm:$0xff]   ;;  %v344_v29 = vand.u32 %v2358_v24, %v2458_v4  ;;  %v2365_v33 = vld [vmem:[%s3189_s0 + $0x18] ss:$76 sps:$4 sm:$0xff]   ;;  %v68_v38 = vld [vmem:[%s3191_s2 + $0x8] sm:$0xff] }
   0x9   :  { %v2370_v27 = vld [vmem:[%s3189_s0 + $0xbc] ss:$76 sps:$4 sm:$0x3f]   ;;  %v2376_v32 = vld [vmem:[%s3189_s0 + $0xc4] ss:$76 sps:$4 sm:$0x3f]  }
   0xa   :  { %v2367_v30 = vld [vmem:[%s3189_s0 + $0x1c] ss:$76 sps:$4 sm:$0xff]   ;;  %v353_v31 = vand.u32 %v2370_v27, %v2458_v4  ;;  %v67_v34 = vld [vmem:[%s3191_s2] sm:$0xff]  ;;  %v359_v36 = vand.u32 %v2376_v32, %v2458_v4  ;;  %v2558_v37 = vld [vmem:[%s3190_s1 + $0x10] sm:$0xff]  }
   0xb   :  { %397 = vmatpush1.bf16.msra.mxu0 %v2345_v9  ;;  %2332 = vmatpush1.bf16.msra.mxu1 %v2345_v9  ;;  %v70_v39 = vld [vmem:[%s3191_s2 + $0x18] sm:$0xff]  ;;  %v71_v40 = vld [vmem:[%s3191_s2 + $0x20] sm:$0xff]  ;;  %v72_v41 = vld [vmem:[%s3191_s2 + $0x28] sm:$0xff] }
   0xc   :  { %467 = vmatprep.subr.bf16.mxu1 %v335_v13  ;;  %540 = vmatprep.subr.bf16.mxu0 %v341_v17  ;;  %v2368_v42 = vld [vmem:[%s3189_s0 + $0xb8] ss:$76 sps:$4 sm:$0x3f]   ;;  %v73_v43 = vld [vmem:[%s3191_s2 + $0x30] sm:$0xff] }
   0xd   :  { %77 = vperm.xlu0 %2338, %v67_v34   ;;  %92 = vperm.xlu1 %2339, %v70_v39   ;;  %v74_v44 = vld [vmem:[%s3191_s2 + $0x38] sm:$0xff] }
   0xe   :  { %2111 = vmatmul.mubr.msk.bf16.vlgmr.msra.gmra.mxu0 %vm308_vm2, %v2488_v15  ;;  %2114 = vmatmul.mubr.msk.bf16.vlgmr.msra.gmra.mxu1 %vm308_vm2, %v2493_v16 }
   0xf   :  { %468 = vmatpush1.bf16.msra.mxu1 %v332_v18  ;;  %541 = vmatpush1.bf16.msra.mxu0 %v338_v19 }
  0x10   :  { %469 = vmatprep.subr.bf16.mxu1 %v2356_v20  ;;  %424 = vmatprep.mubr.bf16.mxu0 %v2423_v5 }
  0x11   :  { %487 = vmatprep.mubr.bf16.mxu1 %v2423_v5  ;;  %542 = vmatprep.subr.bf16.mxu0 %v2363_v22 }
  0x12   :  { %82 = vperm.xlu0 %2338, %v68_v38   ;;  %102 = vperm.xlu1 %2339, %v72_v41  }
  0x13   :  { %470 = vmatpush1.bf16.msra.mxu1 %v2354_v23  ;;  %543 = vmatpush1.bf16.msra.mxu0 %v2361_v25 }
  0x14   :  { %613 = vmatprep.subr.bf16.mxu1 %v347_v26  ;;  %686 = vmatprep.subr.bf16.mxu0 %v353_v31 }
  0x16   :  { %2112 = vmatmul.mubr.msk.bf16.gmra.mxu0 %vm308_vm2, %v2529_v28  ;;  %2115 = vmatmul.mubr.msk.bf16.vlgmr.msra.gmra.mxu1 %vm308_vm2, %v2488_v15 }
  0x17   :  { %614 = vmatpush1.bf16.msra.mxu1 %v344_v29  ;;  %434 = vmatprep.mubr.bf16.mxu0 %v2423_v5 }
  0x18   :  { %497 = vmatprep.mubr.bf16.mxu1 %v2423_v5  ;;  %615 = vmatprep.subr.bf16.mxu1 %v2367_v30 }
  0x19   :  { %97 = vperm.xlu0 %2338, %v71_v40  }
  0x1b   :  { %616 = vmatpush1.bf16.msra.mxu1 %v2365_v33 }
  0x1c   :  { %759 = vmatprep.subr.bf16.mxu1 %v359_v36 }
  0x1e   :  { %2113 = vmatmul.mubr.msk.bf16.gmra.mxu0 %vm308_vm2, %v2558_v37  ;;  %2116 = vmatmul.mubr.msk.bf16.gmra.mxu1 %vm308_vm2, %v2529_v28 }
  0x1f   :  { %507 = vmatprep.mubr.bf16.mxu1 %v2423_v5  ;;  %560 = vmatprep.mubr.bf16.mxu0 %v2423_v5 }
  0x20   :  { %9 = vsyncpa [#allocation3], 0  ;;  %v350_v45 = vand.u32 %v2368_v42, %v2458_v4  ;;  %v2373_v46 = vld [vmem:[%s3189_s0 + $0x24] ss:$76 sps:$4 sm:$0xff]   ;;  %107 = vperm.xlu0 %2338, %v73_v43   ;;  %112 = vperm.xlu1 %2339, %v74_v44   ;;  %v2371_v48 = vld [vmem:[%s3189_s0 + $0x20] ss:$76 sps:$4 sm:$0xff]   ;;  %v1262_v13 = vlaneseq }
  0x21   :  { %v2382_v47 = vld [vmem:[%s3189_s0 + $0xcc] ss:$76 sps:$4 sm:$0x3f]   ;;  %v2388_v53 = vld [vmem:[%s3189_s0 + $0xd4] ss:$76 sps:$4 sm:$0x3f]  }
  0x22   :  { %v365_v49 = vand.u32 %v2382_v47, %v2458_v4  ;;  %v2374_v50 = vld [vmem:[%s3189_s0 + $0xc0] ss:$76 sps:$4 sm:$0x3f]   ;;  %v2377_v54 = vld [vmem:[%s3189_s0 + $0x28] ss:$76 sps:$4 sm:$0xff]   ;;  %v371_v55 = vand.u32 %v2388_v53, %v2458_v4 }
  0x23   :  { %v356_v51 = vand.u32 %v2374_v50, %v2458_v4  ;;  %v2379_v52 = vld [vmem:[%s3189_s0 + $0x2c] ss:$76 sps:$4 sm:$0xff]   ;;  %v2380_v56 = vld [vmem:[%s3189_s0 + $0xc8] ss:$76 sps:$4 sm:$0x3f]   ;;  %v2774_v20 = vld [vmem:[%s3192_s3] sm:$0xff] }
  0x24   :  { %v362_v57 = vand.u32 %v2380_v56, %v2458_v4  ;;  %v2385_v58 = vld [vmem:[%s3189_s0 + $0x34] ss:$76 sps:$4 sm:$0xff]   ;;  %v2394_v59 = vld [vmem:[%s3189_s0 + $0xdc] ss:$76 sps:$4 sm:$0x3f]  }
  0x25   :  { %v2383_v60 = vld [vmem:[%s3189_s0 + $0x30] ss:$76 sps:$4 sm:$0xff]   ;;  %v377_v61 = vand.u32 %v2394_v59, %v2458_v4  ;;  %v2398_v1 = vld [vmem:[%s3189_s0 + $0xe0] ss:$76 sps:$4 sm:$0x3f]  }
  0x26   :  { %2117 = vmatmul.mubr.msk.bf16.gmra.mxu1 %vm308_vm2, %v2558_v37  ;;  %2119 = vmatmul.mubr.msk.bf16.vlgmr.msra.gmra.mxu0 %vm308_vm2, %v2488_v15  ;;  %v2386_v62 = vld [vmem:[%s3189_s0 + $0xd0] ss:$76 sps:$4 sm:$0x3f]   ;;  %v2389_v2 = vld [vmem:[%s3189_s0 + $0x38] ss:$76 sps:$4 sm:$0xff]   ;;  %v380_v3 = vand.u32 %v2398_v1, %v2458_v4 }
  0x27   :  { %687 = vmatpush1.bf16.msra.mxu0 %v350_v45  ;;  %517 = vmatprep.mubr.bf16.mxu1 %v2423_v5  ;;  %v368_v63 = vand.u32 %v2386_v62, %v2458_v4  ;;  %v2391_v0 = vld [vmem:[%s3189_s0 + $0x3c] ss:$76 sps:$4 sm:$0xff]   ;;  %v2392_v6 = vld [vmem:[%s3189_s0 + $0xd8] ss:$76 sps:$4 sm:$0x3f]  }
  0x28   :  { %570 = vmatprep.mubr.bf16.mxu0 %v2423_v5  ;;  %688 = vmatprep.subr.bf16.mxu0 %v2373_v46  ;;  %v374_v7 = vand.u32 %v2392_v6, %v2458_v4  ;;  %v2397_v8 = vld [vmem:[%s3189_s0 + $0x44] ss:$76 sps:$4 sm:$0xff]   ;;  %v2395_v9 = vld [vmem:[%s3189_s0 + $0x40] ss:$76 sps:$4 sm:$0xff]   ;;  %v2399_v4 = vld [vmem:[%s3189_s0 + $0x48] ss:$76 sps:$4 sm:$0xff]  }
  0x2b   :  { %689 = vmatpush1.bf16.msra.mxu0 %v2371_v48 }
  0x2c   :  { %832 = vmatprep.subr.bf16.mxu0 %v365_v49 }
  0x2e   :  { %2118 = vmatmul.mubr.msk.bf16.gmra.mxu1 %vm308_vm2, %v2493_v16  ;;  %2120 = vmatmul.mubr.msk.bf16.gmra.mxu0 %vm308_vm2, %v2529_v28 }
  0x2f   :  { %580 = vmatprep.mubr.bf16.mxu0 %v2423_v5  ;;  %633 = vmatprep.mubr.bf16.mxu1 %v2423_v5 }
  0x36   :  { %2121 = vmatmul.mubr.msk.bf16.gmra.mxu0 %vm308_vm2, %v2558_v37  ;;  %2123 = vmatmul.mubr.msk.bf16.vlgmr.msra.gmra.mxu1 %vm308_vm2, %v2488_v15 }
  0x37   :  { %760 = vmatpush1.bf16.msra.mxu1 %v356_v51  ;;  %590 = vmatprep.mubr.bf16.mxu0 %v2423_v5 }
  0x38   :  { %643 = vmatprep.mubr.bf16.mxu1 %v2423_v5  ;;  %761 = vmatprep.subr.bf16.mxu1 %v2379_v52 }
  0x3b   :  { %762 = vmatpush1.bf16.msra.mxu1 %v2377_v54 }
  0x3c   :  { %905 = vmatprep.subr.bf16.mxu1 %v371_v55 }
  0x3e   :  { %2122 = vmatmul.mubr.msk.bf16.gmra.mxu0 %vm308_vm2, %v2493_v16  ;;  %2124 = vmatmul.mubr.msk.bf16.gmra.mxu1 %vm308_vm2, %v2529_v28 }
  0x3f   :  { %653 = vmatprep.mubr.bf16.mxu1 %v2423_v5  ;;  %706 = vmatprep.mubr.bf16.mxu0 %v2423_v5 }
  0x46   :  { %2125 = vmatmul.mubr.msk.bf16.gmra.mxu1 %vm308_vm2, %v2558_v37  ;;  %2127 = vmatmul.mubr.msk.bf16.vlgmr.msra.gmra.mxu0 %vm308_vm2, %v2488_v15 }
  0x47   :  { %833 = vmatpush1.bf16.msra.mxu0 %v362_v57  ;;  %663 = vmatprep.mubr.bf16.mxu1 %v2423_v5 }
  0x48   :  { %716 = vmatprep.mubr.bf16.mxu0 %v2423_v5  ;;  %834 = vmatprep.subr.bf16.mxu0 %v2385_v58 }
  0x4b   :  { %835 = vmatpush1.bf16.msra.mxu0 %v2383_v60 }
  0x4c   :  { %978 = vmatprep.subr.bf16.mxu0 %v377_v61 }
  0x4e   :  { %2126 = vmatmul.mubr.msk.bf16.gmra.mxu1 %vm308_vm2, %v2493_v16  ;;  %2128 = vmatmul.mubr.msk.bf16.gmra.mxu0 %vm308_vm2, %v2529_v28 }
  0x4f   :  { %726 = vmatprep.mubr.bf16.mxu0 %v2423_v5  ;;  %779 = vmatprep.mubr.bf16.mxu1 %v2423_v5 }
  0x56   :  { %2129 = vmatmul.mubr.msk.bf16.gmra.mxu0 %vm308_vm2, %v2558_v37  ;;  %2131 = vmatmul.mubr.msk.bf16.vlgmr.msra.gmra.mxu1 %vm308_vm2, %v2488_v15 }
  0x57   :  { %906 = vmatpush1.bf16.msra.mxu1 %v368_v63  ;;  %736 = vmatprep.mubr.bf16.mxu0 %v2423_v5 }
  0x58   :  { %789 = vmatprep.mubr.bf16.mxu1 %v2423_v5  ;;  %907 = vmatprep.subr.bf16.mxu1 %v2391_v0 }
  0x5b   :  { %908 = vmatpush1.bf16.msra.mxu1 %v2389_v2 }
  0x5c   :  { %2317 = vmatprep.subr.bf16.mxu1 %v380_v3 }
  0x5e   :  { %2130 = vmatmul.mubr.msk.bf16.gmra.mxu0 %vm308_vm2, %v2493_v16  ;;  %2132 = vmatmul.mubr.msk.bf16.gmra.mxu1 %vm308_vm2, %v2529_v28 }
  0x5f   :  { %799 = vmatprep.mubr.bf16.mxu1 %v2423_v5  ;;  %852 = vmatprep.mubr.bf16.mxu0 %v2423_v5 }
  0x66   :  { %2133 = vmatmul.mubr.msk.bf16.gmra.mxu1 %vm308_vm2, %v2558_v37  ;;  %2135 = vmatmul.mubr.msk.bf16.vlgmr.msra.gmra.mxu0 %vm308_vm2, %v2488_v15 }
  0x67   :  { %979 = vmatpush1.bf16.msra.mxu0 %v374_v7  ;;  %809 = vmatprep.mubr.bf16.mxu1 %v2423_v5 }
  0x68   :  { %862 = vmatprep.mubr.bf16.mxu0 %v2423_v5  ;;  %980 = vmatprep.subr.bf16.mxu0 %v2397_v8 }
  0x6b   :  { %981 = vmatpush1.bf16.msra.mxu0 %v2395_v9 }
  0x6e   :  { %2134 = vmatmul.mubr.msk.bf16.gmra.mxu1 %vm308_vm2, %v2493_v16  ;;  %2136 = vmatmul.mubr.msk.bf16.gmra.mxu0 %vm308_vm2, %v2529_v28 }
  0x6f   :  { %872 = vmatprep.mubr.bf16.mxu0 %v2423_v5  ;;  %925 = vmatprep.mubr.bf16.mxu1 %v2423_v5 }
  0x76   :  { %2137 = vmatmul.mubr.msk.bf16.gmra.mxu0 %vm308_vm2, %v2558_v37  ;;  %2139 = vmatmul.mubr.msk.bf16.vlgmr.msra.gmra.mxu1 %vm308_vm2, %v2488_v15 }
  0x77   :  { %2318 = vmatpush3.bf16.msra.mxu1 %v380_v3  ;;  %882 = vmatprep.mubr.bf16.mxu0 %v2423_v5 }
  0x78   :  { %935 = vmatprep.mubr.bf16.mxu1 %v2423_v5  ;;  %2319 = vmatprep.subr.bf16.mxu1 %v2399_v4 }
  0x7b   :  { %2320 = vmatpush3.bf16.msra.mxu1 %v2399_v4 }
  0x7e   :  { %2138 = vmatmul.mubr.msk.bf16.gmra.mxu0 %vm308_vm2, %v2493_v16  ;;  %2140 = vmatmul.mubr.msk.bf16.gmra.mxu1 %vm308_vm2, %v2529_v28 }
  0x7f   :  { %945 = vmatprep.mubr.bf16.mxu1 %v2423_v5  ;;  %998 = vmatprep.mubr.bf16.mxu0 %v2423_v5  ;;  %v2751_v11 = vpop.permute.xlu1 %87 }
  0x86   :  { %2141 = vmatmul.mubr.msk.bf16.gmra.mxu1 %vm308_vm2, %v2558_v37  ;;  %2143 = vmatmul.mubr.msk.bf16.vlgmr.msra.gmra.mxu0 %vm308_vm2, %v2488_v15 }
  0x87   :  { %955 = vmatprep.mubr.bf16.mxu1 %v2423_v5  ;;  %1008 = vmatprep.mubr.bf16.mxu0 %v2423_v5 }
  0x88   :  { %v2749_v10 = vpop.permute.xlu0 %77  ;;  %v2755_v14 = vpop.permute.xlu1 %92 }
  0x8d   :  { %v2753_v12 = vpop.permute.xlu0 %82  ;;  %v2761_v17 = vpop.permute.xlu1 %102 }
  0x8e   :  { %2142 = vmatmul.mubr.msk.bf16.gmra.mxu1 %vm308_vm2, %v2493_v16  ;;  %2144 = vmatmul.mubr.msk.bf16.gmra.mxu0 %vm308_vm2, %v2529_v28 }
  0x8f   :  { %1018 = vmatprep.mubr.bf16.mxu0 %v2423_v5  ;;  %2321 = vmatprep.mubr.msk.bf16.mxu1 %vm308_vm2, %v2488_v15 }
  0x94   :  { %v2757_v15 = vpop.permute.xlu0 %97 }
  0x96   :  { %2145 = vmatmul.mubr.msk.bf16.gmra.mxu0 %vm308_vm2, %v2558_v37  ;;  %2322 = vmatmul.mubr.msk.bf16.vlgmr.msra.gmra.mxu1 %vm308_vm2, %v2529_v28 }
  0x97   :  { %1028 = vmatprep.mubr.bf16.mxu0 %v2423_v5  ;;  %2325 = vmatprep.mubr.msk.bf16.mxu1 %vm308_vm2, %v2558_v37  ;;  %v2759_v5 = vshrl.u32 %v1262_v13, 7 }
  0x99   :  { %v2764_v18 = vsub.s32 0, %v2759_v5  ;;  %v2791_v36 = vsub.s32 2, %v2759_v5  ;;  %v1276_v37 = vsub.s32 3, %v2759_v5 }
  0x9b   :  { %v2766_v19 = vpop.permute.xlu0 %107  ;;  %v2780_v25 = vrot.slane %v2774_v20, %v2764_v18  ;;  %v2788_v33 = vpop.permute.xlu1 %112  ;;  %v2804_v54 = vrot.slane %v2774_v20, %v2791_v36  ;;  %v2809_v55 = vrot.slane %v2774_v20, %v1276_v37 }
  0x9e   :  { %2146 = vmatmul.mubr.msk.bf16.gmra.mxu0 %vm308_vm2, %v2493_v16  ;;  %2326 = vmatmul.mubr.msk.bf16.gmra.mxu1 %vm308_vm2, %v2493_v16  ;;  %v2769_v16 = vsub.s32 1, %v2759_v5 }
  0xa0   :  { %v2784_v27 = vrot.slane %v2774_v20, %v2769_v16 }
  0xce   :  { %v416_v21 = vpop.f32.mrf.mxu0  ;;  %v446_v22 = vpop.f32.mrf.mxu1 }
  0xcf   :  { %v417_v23 = vadd.f32 %v416_v21, %v2749_v10  ;;  %v447_v24 = vadd.f32 %v446_v22, %v2766_v19 }
  0xd0   :  { %v418_v26 = vpop.f32.mrf.mxu0  ;;  %v448_v28 = vpop.f32.mrf.mxu1 }
  0xd1   :  { %v1104_v29 = vmax.f32 %v417_v23, 0.0  ;;  %v419_v30 = vadd.f32 %v418_v26, %v2749_v10  ;;  %v449_v31 = vadd.f32 %v448_v28, %v2766_v19  ;;  %v1218_v32 = vmax.f32 %v447_v24, 0.0 }
  0xd2   :  { %v420_v34 = vpop.f32.mrf.mxu0  ;;  %v450_v35 = vpop.f32.mrf.mxu1 }
  0xd3   :  { %v1105_v38 = vmax.f32 %v419_v30, 0.0  ;;  %v1219_v39 = vmax.f32 %v449_v31, 0.0  ;;  %v1357_v40 = vmul.f32 %v2780_v25, %v1104_v29  ;;  %v1471_v41 = vmul.f32 %v2780_v25, %v1218_v32 }
  0xd4   :  { %v421_v42 = vadd.f32 %v420_v34, %v2753_v12  ;;  %v451_v43 = vadd.f32 %v450_v35, %v2788_v33  ;;  %v422_v44 = vpop.f32.mrf.mxu0  ;;  %v452_v45 = vpop.f32.mrf.mxu1 }
  0xd5   :  { %v1358_v46 = vmul.f32 %v2784_v27, %v1105_v38  ;;  %v1472_v47 = vmul.f32 %v2784_v27, %v1219_v39  ;;  %v423_v48 = vadd.f32 %v422_v44, %v2753_v12  ;;  %v453_v49 = vadd.f32 %v452_v45, %v2788_v33 }
  0xd6   :  { %v1123_v50 = vmax.f32 %v421_v42, 0.0  ;;  %v1237_v51 = vmax.f32 %v451_v43, 0.0  ;;  %v426_v52 = vpop.f32.mrf.mxu0  ;;  %v489_v53 = vpop.f32.mrf.mxu1 }
  0xd7   :  { %v2231_v56 = vpack.c.bf16 %v1358_v46, %v1357_v40  ;;  %v2291_v57 = vpack.c.bf16 %v1472_v47, %v1471_v41  ;;  %v1124_v58 = vmax.f32 %v423_v48, 0.0  ;;  %v1238_v59 = vmax.f32 %v453_v49, 0.0 }
  0xd8   :  { %v1376_v60 = vmul.f32 %v2780_v25, %v1123_v50  ;;  %v1490_v61 = vmul.f32 %v2780_v25, %v1237_v51  ;;  %v427_v62 = vadd.f32 %v426_v52, %v2751_v11  ;;  %v490_v63 = vadd.f32 %v489_v53, %v2749_v10  ;;  %v428_v0 = vpop.f32.mrf.mxu0  ;;  %v491_v1 = vpop.f32.mrf.mxu1 }
  0xd9   :  { %1973 = vst [vmem:[#allocation2] sm:$0xff] %v2231_v56  ;;  %2033 = vst [vmem:[#allocation2 + $0x1c8] sm:$0xff] %v2291_v57  ;;  %v1377_v2 = vmul.f32 %v2784_v27, %v1124_v58  ;;  %v1491_v3 = vmul.f32 %v2784_v27, %v1238_v59  ;;  %v429_v6 = vadd.f32 %v428_v0, %v2751_v11  ;;  %v1280_v0 = vsub.s32 4, %v2759_v5 }
  0xda   :  { %v492_v7 = vadd.f32 %v491_v1, %v2749_v10  ;;  %v1142_v8 = vmax.f32 %v427_v62, 0.0  ;;  %v1106_v9 = vmax.f32 %v490_v63, 0.0  ;;  %v430_v4 = vpop.f32.mrf.mxu0  ;;  %v493_v13 = vpop.f32.mrf.mxu1  ;;  %v1284_v1 = vsub.s32 5, %v2759_v5 }
  0xdb   :  { %v2241_v21 = vpack.c.bf16 %v1377_v2, %v1376_v60  ;;  %v2301_v22 = vpack.c.bf16 %v1491_v3, %v1490_v61  ;;  %v1143_v23 = vmax.f32 %v429_v6, 0.0  ;;  %v431_v29 = vadd.f32 %v430_v4, %v2755_v14 }
  0xdc   :  { %v1107_v24 = vmax.f32 %v492_v7, 0.0  ;;  %v1395_v26 = vmul.f32 %v2780_v25, %v1142_v8  ;;  %v1359_v28 = vmul.f32 %v2804_v54, %v1106_v9  ;;  %v494_v30 = vadd.f32 %v493_v13, %v2753_v12  ;;  %v432_v31 = vpop.f32.mrf.mxu0  ;;  %v495_v32 = vpop.f32.mrf.mxu1 }
  0xdd   :  { %1983 = vst [vmem:[#allocation2 + $0x4c] sm:$0xff] %v2241_v21  ;;  %2043 = vst [vmem:[#allocation2 + $0x214] sm:$0xff] %v2301_v22  ;;  %v1396_v34 = vmul.f32 %v2784_v27, %v1143_v23  ;;  %v433_v38 = vadd.f32 %v432_v31, %v2755_v14  ;;  %v496_v39 = vadd.f32 %v495_v32, %v2753_v12  ;;  %v1161_v40 = vmax.f32 %v431_v29, 0.0 }
  0xde   :  { %v1360_v35 = vmul.f32 %v2809_v55, %v1107_v24  ;;  %v1125_v41 = vmax.f32 %v494_v30, 0.0  ;;  %v436_v42 = vpop.f32.mrf.mxu0  ;;  %v499_v43 = vpop.f32.mrf.mxu1 }
  0xdf   :  { %v2251_v44 = vpack.c.bf16 %v1396_v34, %v1395_v26  ;;  %v1162_v46 = vmax.f32 %v433_v38, 0.0  ;;  %v1126_v47 = vmax.f32 %v496_v39, 0.0  ;;  %v1414_v48 = vmul.f32 %v2780_v25, %v1161_v40 }
  0xe0   :  { %v2232_v45 = vpack.c.bf16 %v1360_v35, %v1359_v28  ;;  %v1378_v49 = vmul.f32 %v2804_v54, %v1125_v41  ;;  %v437_v50 = vadd.f32 %v436_v42, %v2757_v15  ;;  %v500_v51 = vadd.f32 %v499_v43, %v2751_v11  ;;  %v438_v52 = vpop.f32.mrf.mxu0  ;;  %v501_v53 = vpop.f32.mrf.mxu1 }
  0xe1   :  { %1993 = vst [vmem:[#allocation2 + $0x98] sm:$0xff] %v2251_v44  ;;  %v1415_v56 = vmul.f32 %v2784_v27, %v1162_v46  ;;  %v1379_v57 = vmul.f32 %v2809_v55, %v1126_v47  ;;  %v439_v58 = vadd.f32 %v438_v52, %v2757_v15  ;;  %v502_v59 = vadd.f32 %v501_v53, %v2751_v11 }
  0xe2   :  { %1974 = vst [vmem:[#allocation2 + $0x8] sm:$0xff] %v2232_v45  ;;  %v1180_v60 = vmax.f32 %v437_v50, 0.0  ;;  %v1144_v61 = vmax.f32 %v500_v51, 0.0  ;;  %v440_v62 = vpop.f32.mrf.mxu0  ;;  %v503_v63 = vpop.f32.mrf.mxu1  ;;  %v2848_v34 = vrot.slane %v2774_v20, %v1280_v0  ;;  %v2853_v35 = vrot.slane %v2774_v20, %v1284_v1 }
  0xe3   :  { %v2261_v2 = vpack.c.bf16 %v1415_v56, %v1414_v48  ;;  %v2242_v3 = vpack.c.bf16 %v1379_v57, %v1378_v49  ;;  %v1181_v6 = vmax.f32 %v439_v58, 0.0  ;;  %v1145_v7 = vmax.f32 %v502_v59, 0.0 }
  0xe4   :  { %v1433_v8 = vmul.f32 %v2780_v25, %v1180_v60  ;;  %v1397_v9 = vmul.f32 %v2804_v54, %v1144_v61  ;;  %v441_v4 = vadd.f32 %v440_v62, %v2761_v17  ;;  %v504_v13 = vadd.f32 %v503_v63, %v2755_v14  ;;  %v442_v21 = vpop.f32.mrf.mxu0  ;;  %v505_v22 = vpop.f32.mrf.mxu1 }
  0xe5   :  { %2003 = vst [vmem:[#allocation2 + $0xe4] sm:$0xff] %v2261_v2  ;;  %1984 = vst [vmem:[#allocation2 + $0x54] sm:$0xff] %v2242_v3  ;;  %v1434_v23 = vmul.f32 %v2784_v27, %v1181_v6  ;;  %v1398_v24 = vmul.f32 %v2809_v55, %v1145_v7  ;;  %v443_v26 = vadd.f32 %v442_v21, %v2761_v17 }
  0xe6   :  { %v506_v28 = vadd.f32 %v505_v22, %v2755_v14  ;;  %v1199_v29 = vmax.f32 %v441_v4, 0.0  ;;  %v1163_v30 = vmax.f32 %v504_v13, 0.0  ;;  %v509_v31 = vpop.f32.mrf.mxu1  ;;  %v562_v32 = vpop.f32.mrf.mxu0 }
  0xe7   :  { %v2271_v38 = vpack.c.bf16 %v1434_v23, %v1433_v8  ;;  %v2252_v39 = vpack.c.bf16 %v1398_v24, %v1397_v9  ;;  %v1200_v40 = vmax.f32 %v443_v26, 0.0  ;;  %v510_v44 = vadd.f32 %v509_v31, %v2757_v15 }
  0xe8   :  { %v1164_v41 = vmax.f32 %v506_v28, 0.0  ;;  %v1452_v42 = vmul.f32 %v2780_v25, %v1199_v29  ;;  %v1416_v43 = vmul.f32 %v2804_v54, %v1163_v30  ;;  %v563_v45 = vadd.f32 %v562_v32, %v2749_v10  ;;  %v511_v46 = vpop.f32.mrf.mxu1  ;;  %v564_v47 = vpop.f32.mrf.mxu0 }
  0xe9   :  { %2013 = vst [vmem:[#allocation2 + $0x130] sm:$0xff] %v2271_v38  ;;  %1994 = vst [vmem:[#allocation2 + $0xa0] sm:$0xff] %v2252_v39  ;;  %v1453_v48 = vmul.f32 %v2784_v27, %v1200_v40  ;;  %v512_v50 = vadd.f32 %v511_v46, %v2757_v15  ;;  %v565_v51 = vadd.f32 %v564_v47, %v2749_v10  ;;  %v1182_v52 = vmax.f32 %v510_v44, 0.0 }
  0xea   :  { %v1417_v49 = vmul.f32 %v2809_v55, %v1164_v41  ;;  %v1108_v25 = vmax.f32 %v563_v45, 0.0  ;;  %v513_v53 = vpop.f32.mrf.mxu1  ;;  %v566_v56 = vpop.f32.mrf.mxu0 }
  0xeb   :  { %v2281_v57 = vpack.c.bf16 %v1453_v48, %v1452_v42  ;;  %v1183_v59 = vmax.f32 %v512_v50, 0.0  ;;  %v1109_v60 = vmax.f32 %v565_v51, 0.0  ;;  %v1435_v61 = vmul.f32 %v2804_v54, %v1182_v52 }
  0xec   :  { %v2262_v58 = vpack.c.bf16 %v1417_v49, %v1416_v43  ;;  %v1361_v62 = vmul.f32 %v2848_v34, %v1108_v25  ;;  %v514_v27 = vadd.f32 %v513_v53, %v2761_v17  ;;  %v567_v63 = vadd.f32 %v566_v56, %v2753_v12  ;;  %v515_v2 = vpop.f32.mrf.mxu1  ;;  %v568_v3 = vpop.f32.mrf.mxu0 }
  0xed   :  { %2023 = vst [vmem:[#allocation2 + $0x17c] sm:$0xff] %v2281_v57  ;;  %v1436_v6 = vmul.f32 %v2809_v55, %v1183_v59  ;;  %v1362_v7 = vmul.f32 %v2853_v35, %v1109_v60  ;;  %v516_v8 = vadd.f32 %v515_v2, %v2761_v17  ;;  %v569_v9 = vadd.f32 %v568_v3, %v2753_v12 }
  0xee   :  { %2004 = vst [vmem:[#allocation2 + $0xec] sm:$0xff] %v2262_v58  ;;  %v1201_v4 = vmax.f32 %v514_v27, 0.0  ;;  %v1127_v13 = vmax.f32 %v567_v63, 0.0  ;;  %v519_v21 = vpop.f32.mrf.mxu1  ;;  %v572_v22 = vpop.f32.mrf.mxu0  ;;  %v1288_v48 = vsub.s32 6, %v2759_v5  ;;  %v1292_v49 = vsub.s32 7, %v2759_v5 }
  0xef   :  { %v2272_v23 = vpack.c.bf16 %v1436_v6, %v1435_v61  ;;  %v2233_v24 = vpack.c.bf16 %v1362_v7, %v1361_v62  ;;  %v1202_v26 = vmax.f32 %v516_v8, 0.0  ;;  %v1128_v28 = vmax.f32 %v569_v9, 0.0 }
  0xf0   :  { %v1454_v29 = vmul.f32 %v2804_v54, %v1201_v4  ;;  %v1380_v30 = vmul.f32 %v2848_v34, %v1127_v13  ;;  %v520_v31 = vadd.f32 %v519_v21, %v2766_v19  ;;  %v573_v32 = vadd.f32 %v572_v22, %v2751_v11  ;;  %v521_v38 = vpop.f32.mrf.mxu1  ;;  %v574_v39 = vpop.f32.mrf.mxu0 }
  0xf1   :  { %2014 = vst [vmem:[#allocation2 + $0x138] sm:$0xff] %v2272_v23  ;;  %1975 = vst [vmem:[#allocation2 + $0x10] sm:$0xff] %v2233_v24  ;;  %v1455_v40 = vmul.f32 %v2809_v55, %v1202_v26  ;;  %v1381_v41 = vmul.f32 %v2853_v35, %v1128_v28  ;;  %v522_v42 = vadd.f32 %v521_v38, %v2766_v19 }
  0xf2   :  { %v575_v43 = vadd.f32 %v574_v39, %v2751_v11  ;;  %v1220_v44 = vmax.f32 %v520_v31, 0.0  ;;  %v1146_v45 = vmax.f32 %v573_v32, 0.0  ;;  %v523_v46 = vpop.f32.mrf.mxu1  ;;  %v576_v47 = vpop.f32.mrf.mxu0  ;;  %v2892_v8 = vrot.slane %v2774_v20, %v1288_v48 }
  0xf3   :  { %v2282_v50 = vpack.c.bf16 %v1455_v40, %v1454_v29  ;;  %v2243_v51 = vpack.c.bf16 %v1381_v41, %v1380_v30  ;;  %v1221_v52 = vmax.f32 %v522_v42, 0.0  ;;  %v524_v57 = vadd.f32 %v523_v46, %v2788_v33 }
  0xf4   :  { %v1147_v25 = vmax.f32 %v575_v43, 0.0  ;;  %v1473_v53 = vmul.f32 %v2804_v54, %v1220_v44  ;;  %v1399_v56 = vmul.f32 %v2848_v34, %v1146_v45  ;;  %v577_v58 = vadd.f32 %v576_v47, %v2755_v14  ;;  %v525_v59 = vpop.f32.mrf.mxu1  ;;  %v578_v60 = vpop.f32.mrf.mxu0 }
  0xf5   :  { %2024 = vst [vmem:[#allocation2 + $0x184] sm:$0xff] %v2282_v50  ;;  %1985 = vst [vmem:[#allocation2 + $0x5c] sm:$0xff] %v2243_v51  ;;  %v1474_v61 = vmul.f32 %v2809_v55, %v1221_v52  ;;  %v526_v27 = vadd.f32 %v525_v59, %v2788_v33  ;;  %v579_v63 = vadd.f32 %v578_v60, %v2755_v14  ;;  %v1239_v2 = vmax.f32 %v524_v57, 0.0 }
  0xf6   :  { %v1400_v62 = vmul.f32 %v2853_v35, %v1147_v25  ;;  %v1165_v3 = vmax.f32 %v577_v58, 0.0  ;;  %v582_v6 = vpop.f32.mrf.mxu0  ;;  %v635_v7 = vpop.f32.mrf.mxu1  ;;  %v2897_v9 = vrot.slane %v2774_v20, %v1292_v49 }
  0xf7   :  { %v2292_v4 = vpack.c.bf16 %v1474_v61, %v1473_v53  ;;  %v1240_v21 = vmax.f32 %v526_v27, 0.0  ;;  %v1166_v22 = vmax.f32 %v579_v63, 0.0  ;;  %v1492_v23 = vmul.f32 %v2804_v54, %v1239_v2 }
  0xf8   :  { %v2253_v13 = vpack.c.bf16 %v1400_v62, %v1399_v56  ;;  %v1418_v24 = vmul.f32 %v2848_v34, %v1165_v3  ;;  %v583_v26 = vadd.f32 %v582_v6, %v2757_v15  ;;  %v636_v28 = vadd.f32 %v635_v7, %v2749_v10  ;;  %v584_v29 = vpop.f32.mrf.mxu0  ;;  %v637_v30 = vpop.f32.mrf.mxu1 }
  0xf9   :  { %2034 = vst [vmem:[#allocation2 + $0x1d0] sm:$0xff] %v2292_v4  ;;  %v1493_v31 = vmul.f32 %v2809_v55, %v1240_v21  ;;  %v1419_v20 = vmul.f32 %v2853_v35, %v1166_v22  ;;  %v585_v32 = vadd.f32 %v584_v29, %v2757_v15  ;;  %v638_v38 = vadd.f32 %v637_v30, %v2749_v10 }
  0xfa   :  { %1995 = vst [vmem:[#allocation2 + $0xa8] sm:$0xff] %v2253_v13  ;;  %v1184_v39 = vmax.f32 %v583_v26, 0.0  ;;  %v1110_v54 = vmax.f32 %v636_v28, 0.0  ;;  %v586_v40 = vpop.f32.mrf.mxu0  ;;  %v639_v41 = vpop.f32.mrf.mxu1 }
  0xfb   :  { %v2302_v42 = vpack.c.bf16 %v1493_v31, %v1492_v23  ;;  %v2263_v43 = vpack.c.bf16 %v1419_v20, %v1418_v24  ;;  %v1185_v44 = vmax.f32 %v585_v32, 0.0  ;;  %v1111_v45 = vmax.f32 %v638_v38, 0.0 }
  0xfc   :  { %v1437_v46 = vmul.f32 %v2848_v34, %v1184_v39  ;;  %v1363_v47 = vmul.f32 %v2892_v8, %v1110_v54  ;;  %v587_v55 = vadd.f32 %v586_v40, %v2761_v17  ;;  %v640_v50 = vadd.f32 %v639_v41, %v2753_v12  ;;  %v588_v51 = vpop.f32.mrf.mxu0  ;;  %v641_v52 = vpop.f32.mrf.mxu1  ;;  %v2926_v54 = vld [vmem:[%s3192_s3 + $0x8] sm:$0xff] }
  0xfd   :  { %2044 = vst [vmem:[#allocation2 + $0x21c] sm:$0xff] %v2302_v42  ;;  %2005 = vst [vmem:[#allocation2 + $0xf4] sm:$0xff] %v2263_v43  ;;  %v1438_v25 = vmul.f32 %v2853_v35, %v1185_v44  ;;  %v1364_v53 = vmul.f32 %v2897_v9, %v1111_v45  ;;  %v589_v56 = vadd.f32 %v588_v51, %v2761_v17 }
  0xfe   :  { %v642_v57 = vadd.f32 %v641_v52, %v2753_v12  ;;  %v1203_v58 = vmax.f32 %v587_v55, 0.0  ;;  %v1129_v59 = vmax.f32 %v640_v50, 0.0  ;;  %v592_v60 = vpop.f32.mrf.mxu0  ;;  %v645_v61 = vpop.f32.mrf.mxu1 }
  0xff   :  { %v2273_v62 = vpack.c.bf16 %v1438_v25, %v1437_v46  ;;  %v2234_v27 = vpack.c.bf16 %v1364_v53, %v1363_v47  ;;  %v1204_v63 = vmax.f32 %v589_v56, 0.0  ;;  %v593_v7 = vadd.f32 %v592_v60, %v2766_v19 }
 0x100   :  { %v1130_v2 = vmax.f32 %v642_v57, 0.0  ;;  %v1456_v3 = vmul.f32 %v2848_v34, %v1203_v58  ;;  %v1382_v6 = vmul.f32 %v2892_v8, %v1129_v59  ;;  %v646_v4 = vadd.f32 %v645_v61, %v2751_v11  ;;  %v594_v13 = vpop.f32.mrf.mxu0  ;;  %v647_v21 = vpop.f32.mrf.mxu1 }
 0x101   :  { %2015 = vst [vmem:[#allocation2 + $0x140] sm:$0xff] %v2273_v62  ;;  %1976 = vst [vmem:[#allocation2 + $0x18] sm:$0xff] %v2234_v27  ;;  %v1457_v22 = vmul.f32 %v2853_v35, %v1204_v63  ;;  %v595_v24 = vadd.f32 %v594_v13, %v2766_v19  ;;  %v648_v26 = vadd.f32 %v647_v21, %v2751_v11  ;;  %v1222_v28 = vmax.f32 %v593_v7, 0.0 }
 0x102   :  { %v1383_v23 = vmul.f32 %v2897_v9, %v1130_v2  ;;  %v1148_v29 = vmax.f32 %v646_v4, 0.0  ;;  %v596_v30 = vpop.f32.mrf.mxu0  ;;  %v649_v31 = vpop.f32.mrf.mxu1  ;;  %v2938_v56 = vrot.slane %v2926_v54, %v2764_v18  ;;  %v2942_v57 = vrot.slane %v2926_v54, %v2769_v16 }
 0x103   :  { %v2283_v20 = vpack.c.bf16 %v1457_v22, %v1456_v3  ;;  %v1223_v38 = vmax.f32 %v595_v24, 0.0  ;;  %v1149_v39 = vmax.f32 %v648_v26, 0.0  ;;  %v1475_v40 = vmul.f32 %v2848_v34, %v1222_v28 }
 0x104   :  { %v2244_v32 = vpack.c.bf16 %v1383_v23, %v1382_v6  ;;  %v1401_v41 = vmul.f32 %v2892_v8, %v1148_v29  ;;  %v597_v42 = vadd.f32 %v596_v30, %v2788_v33  ;;  %v650_v43 = vadd.f32 %v649_v31, %v2755_v14  ;;  %v598_v44 = vpop.f32.mrf.mxu0  ;;  %v651_v45 = vpop.f32.mrf.mxu1 }
 0x105   :  { %2025 = vst [vmem:[#allocation2 + $0x18c] sm:$0xff] %v2283_v20  ;;  %v1476_v46 = vmul.f32 %v2853_v35, %v1223_v38  ;;  %v1402_v47 = vmul.f32 %v2897_v9, %v1149_v39  ;;  %v599_v55 = vadd.f32 %v598_v44, %v2788_v33  ;;  %v652_v50 = vadd.f32 %v651_v45, %v2755_v14 }
 0x106   :  { %1986 = vst [vmem:[#allocation2 + $0x64] sm:$0xff] %v2244_v32  ;;  %v1241_v51 = vmax.f32 %v597_v42, 0.0  ;;  %v1167_v52 = vmax.f32 %v650_v43, 0.0  ;;  %v655_v25 = vpop.f32.mrf.mxu1  ;;  %v708_v53 = vpop.f32.mrf.mxu0 }
 0x107   :  { %v2293_v58 = vpack.c.bf16 %v1476_v46, %v1475_v40  ;;  %v2254_v59 = vpack.c.bf16 %v1402_v47, %v1401_v41  ;;  %v1242_v60 = vmax.f32 %v599_v55, 0.0  ;;  %v1168_v61 = vmax.f32 %v652_v50, 0.0 }
 0x108   :  { %v1494_v62 = vmul.f32 %v2848_v34, %v1241_v51  ;;  %v1420_v27 = vmul.f32 %v2892_v8, %v1167_v52  ;;  %v656_v63 = vadd.f32 %v655_v25, %v2757_v15  ;;  %v709_v2 = vadd.f32 %v708_v53, %v2749_v10  ;;  %v657_v3 = vpop.f32.mrf.mxu1  ;;  %v710_v6 = vpop.f32.mrf.mxu0 }
 0x109   :  { %2035 = vst [vmem:[#allocation2 + $0x1d8] sm:$0xff] %v2293_v58  ;;  %1996 = vst [vmem:[#allocation2 + $0xb0] sm:$0xff] %v2254_v59  ;;  %v1495_v7 = vmul.f32 %v2853_v35, %v1242_v60  ;;  %v1421_v4 = vmul.f32 %v2897_v9, %v1168_v61  ;;  %v658_v13 = vadd.f32 %v657_v3, %v2757_v15 }
 0x10a   :  { %v711_v21 = vadd.f32 %v710_v6, %v2749_v10  ;;  %v1186_v22 = vmax.f32 %v656_v63, 0.0  ;;  %v1112_v34 = vmax.f32 %v709_v2, 0.0  ;;  %v659_v23 = vpop.f32.mrf.mxu1  ;;  %v712_v24 = vpop.f32.mrf.mxu0 }
 0x10b   :  { %v2303_v26 = vpack.c.bf16 %v1495_v7, %v1494_v62  ;;  %v2264_v28 = vpack.c.bf16 %v1421_v4, %v1420_v27  ;;  %v1187_v29 = vmax.f32 %v658_v13, 0.0  ;;  %v660_v35 = vadd.f32 %v659_v23, %v2761_v17 }
 0x10c   :  { %v1113_v30 = vmax.f32 %v711_v21, 0.0  ;;  %v1439_v31 = vmul.f32 %v2892_v8, %v1186_v22  ;;  %v1365_v20 = vmul.f32 %v2938_v56, %v1112_v34  ;;  %v713_v32 = vadd.f32 %v712_v24, %v2753_v12  ;;  %v661_v38 = vpop.f32.mrf.mxu1  ;;  %v714_v39 = vpop.f32.mrf.mxu0 }
 0x10d   :  { %2045 = vst [vmem:[#allocation2 + $0x224] sm:$0xff] %v2303_v26  ;;  %2006 = vst [vmem:[#allocation2 + $0xfc] sm:$0xff] %v2264_v28  ;;  %v1440_v40 = vmul.f32 %v2897_v9, %v1187_v29  ;;  %v662_v42 = vadd.f32 %v661_v38, %v2761_v17  ;;  %v715_v43 = vadd.f32 %v714_v39, %v2753_v12  ;;  %v1205_v44 = vmax.f32 %v660_v35, 0.0 }
 0x10e   :  { %v1366_v41 = vmul.f32 %v2942_v57, %v1113_v30  ;;  %v1131_v45 = vmax.f32 %v713_v32, 0.0  ;;  %v665_v46 = vpop.f32.mrf.mxu1  ;;  %v718_v47 = vpop.f32.mrf.mxu0 }
 0x10f   :  { %v2274_v55 = vpack.c.bf16 %v1440_v40, %v1439_v31  ;;  %v1206_v51 = vmax.f32 %v662_v42, 0.0  ;;  %v1132_v52 = vmax.f32 %v715_v43, 0.0  ;;  %v1458_v25 = vmul.f32 %v2892_v8, %v1205_v44 }
 0x110   :  { %v2235_v50 = vpack.c.bf16 %v1366_v41, %v1365_v20  ;;  %v1384_v53 = vmul.f32 %v2938_v56, %v1131_v45  ;;  %v666_v58 = vadd.f32 %v665_v46, %v2766_v19  ;;  %v719_v59 = vadd.f32 %v718_v47, %v2751_v11  ;;  %v667_v60 = vpop.f32.mrf.mxu1  ;;  %v720_v61 = vpop.f32.mrf.mxu0 }
 0x111   :  { %2016 = vst [vmem:[#allocation2 + $0x148] sm:$0xff] %v2274_v55  ;;  %v1459_v62 = vmul.f32 %v2897_v9, %v1206_v51  ;;  %v1385_v27 = vmul.f32 %v2942_v57, %v1132_v52  ;;  %v668_v63 = vadd.f32 %v667_v60, %v2766_v19  ;;  %v721_v2 = vadd.f32 %v720_v61, %v2751_v11 }
 0x112   :  { %1977 = vst [vmem:[#allocation2 + $0x20] sm:$0xff] %v2235_v50  ;;  %v1224_v3 = vmax.f32 %v666_v58, 0.0  ;;  %v1150_v6 = vmax.f32 %v719_v59, 0.0  ;;  %v669_v7 = vpop.f32.mrf.mxu1  ;;  %v722_v4 = vpop.f32.mrf.mxu0  ;;  %v2978_v42 = vrot.slane %v2926_v54, %v2791_v36  ;;  %v2983_v43 = vrot.slane %v2926_v54, %v1276_v37 }
 0x113   :  { %v2284_v13 = vpack.c.bf16 %v1459_v62, %v1458_v25  ;;  %v2245_v21 = vpack.c.bf16 %v1385_v27, %v1384_v53  ;;  %v1225_v22 = vmax.f32 %v668_v63, 0.0  ;;  %v1151_v34 = vmax.f32 %v721_v2, 0.0 }
 0x114   :  { %v1477_v23 = vmul.f32 %v2892_v8, %v1224_v3  ;;  %v1403_v24 = vmul.f32 %v2938_v56, %v1150_v6  ;;  %v670_v26 = vadd.f32 %v669_v7, %v2788_v33  ;;  %v723_v28 = vadd.f32 %v722_v4, %v2755_v14  ;;  %v671_v29 = vpop.f32.mrf.mxu1  ;;  %v724_v30 = vpop.f32.mrf.mxu0 }
 0x115   :  { %2026 = vst [vmem:[#allocation2 + $0x194] sm:$0xff] %v2284_v13  ;;  %1987 = vst [vmem:[#allocation2 + $0x6c] sm:$0xff] %v2245_v21  ;;  %v1478_v31 = vmul.f32 %v2897_v9, %v1225_v22  ;;  %v1404_v20 = vmul.f32 %v2942_v57, %v1151_v34  ;;  %v672_v35 = vadd.f32 %v671_v29, %v2788_v33 }
 0x116   :  { %v725_v32 = vadd.f32 %v724_v30, %v2755_v14  ;;  %v1243_v38 = vmax.f32 %v670_v26, 0.0  ;;  %v1169_v39 = vmax.f32 %v723_v28, 0.0  ;;  %v728_v40 = vpop.f32.mrf.mxu0  ;;  %v781_v41 = vpop.f32.mrf.mxu1 }
 0x117   :  { %v2294_v44 = vpack.c.bf16 %v1478_v31, %v1477_v23  ;;  %v2255_v45 = vpack.c.bf16 %v1404_v20, %v1403_v24  ;;  %v1244_v46 = vmax.f32 %v672_v35, 0.0  ;;  %v729_v51 = vadd.f32 %v728_v40, %v2757_v15 }
 0x118   :  { %v1170_v47 = vmax.f32 %v725_v32, 0.0  ;;  %v1496_v55 = vmul.f32 %v2892_v8, %v1243_v38  ;;  %v1422_v50 = vmul.f32 %v2938_v56, %v1169_v39  ;;  %v782_v52 = vadd.f32 %v781_v41, %v2749_v10  ;;  %v730_v25 = vpop.f32.mrf.mxu0  ;;  %v783_v53 = vpop.f32.mrf.mxu1 }
 0x119   :  { %2036 = vst [vmem:[#allocation2 + $0x1e0] sm:$0xff] %v2294_v44  ;;  %1997 = vst [vmem:[#allocation2 + $0xb8] sm:$0xff] %v2255_v45  ;;  %v1497_v58 = vmul.f32 %v2897_v9, %v1244_v46  ;;  %v731_v59 = vadd.f32 %v730_v25, %v2757_v15  ;;  %v784_v60 = vadd.f32 %v783_v53, %v2749_v10  ;;  %v1188_v61 = vmax.f32 %v729_v51, 0.0 }
 0x11a   :  { %v1423_v37 = vmul.f32 %v2942_v57, %v1170_v47  ;;  %v1114_v8 = vmax.f32 %v782_v52, 0.0  ;;  %v732_v62 = vpop.f32.mrf.mxu0  ;;  %v785_v27 = vpop.f32.mrf.mxu1 }
 0x11b   :  { %v2304_v63 = vpack.c.bf16 %v1497_v58, %v1496_v55  ;;  %v1189_v3 = vmax.f32 %v731_v59, 0.0  ;;  %v1115_v6 = vmax.f32 %v784_v60, 0.0  ;;  %v1441_v7 = vmul.f32 %v2938_v56, %v1188_v61 }
 0x11c   :  { %v2265_v2 = vpack.c.bf16 %v1423_v37, %v1422_v50  ;;  %v1367_v4 = vmul.f32 %v2978_v42, %v1114_v8  ;;  %v733_v9 = vadd.f32 %v732_v62, %v2761_v17  ;;  %v786_v13 = vadd.f32 %v785_v27, %v2753_v12  ;;  %v734_v21 = vpop.f32.mrf.mxu0  ;;  %v787_v22 = vpop.f32.mrf.mxu1 }
 0x11d   :  { %2046 = vst [vmem:[#allocation2 + $0x22c] sm:$0xff] %v2304_v63  ;;  %v1442_v34 = vmul.f32 %v2942_v57, %v1189_v3  ;;  %v1368_v23 = vmul.f32 %v2983_v43, %v1115_v6  ;;  %v735_v24 = vadd.f32 %v734_v21, %v2761_v17  ;;  %v788_v26 = vadd.f32 %v787_v22, %v2753_v12 }
 0x11e   :  { %2007 = vst [vmem:[#allocation2 + $0x104] sm:$0xff] %v2265_v2  ;;  %v1207_v28 = vmax.f32 %v733_v9, 0.0  ;;  %v1133_v29 = vmax.f32 %v786_v13, 0.0  ;;  %v738_v30 = vpop.f32.mrf.mxu0  ;;  %v791_v31 = vpop.f32.mrf.mxu1 }
 0x11f   :  { %v2275_v20 = vpack.c.bf16 %v1442_v34, %v1441_v7  ;;  %v2236_v35 = vpack.c.bf16 %v1368_v23, %v1367_v4  ;;  %v1208_v32 = vmax.f32 %v735_v24, 0.0  ;;  %v1134_v38 = vmax.f32 %v788_v26, 0.0 }
 0x120   :  { %v1460_v39 = vmul.f32 %v2938_v56, %v1207_v28  ;;  %v1386_v40 = vmul.f32 %v2978_v42, %v1133_v29  ;;  %v739_v41 = vadd.f32 %v738_v30, %v2766_v19  ;;  %v792_v44 = vadd.f32 %v791_v31, %v2751_v11  ;;  %v740_v45 = vpop.f32.mrf.mxu0  ;;  %v793_v46 = vpop.f32.mrf.mxu1 }
 0x121   :  { %2017 = vst [vmem:[#allocation2 + $0x150] sm:$0xff] %v2275_v20  ;;  %1978 = vst [vmem:[#allocation2 + $0x28] sm:$0xff] %v2236_v35  ;;  %v1461_v47 = vmul.f32 %v2942_v57, %v1208_v32  ;;  %v1387_v55 = vmul.f32 %v2983_v43, %v1134_v38  ;;  %v741_v50 = vadd.f32 %v740_v45, %v2766_v19 }
 0x122   :  { %v794_v51 = vadd.f32 %v793_v46, %v2751_v11  ;;  %v1226_v52 = vmax.f32 %v739_v41, 0.0  ;;  %v1152_v25 = vmax.f32 %v792_v44, 0.0  ;;  %v742_v53 = vpop.f32.mrf.mxu0  ;;  %v795_v58 = vpop.f32.mrf.mxu1  ;;  %v3020_v23 = vrot.slane %v2926_v54, %v1280_v0 }
 0x123   :  { %v2285_v37 = vpack.c.bf16 %v1461_v47, %v1460_v39  ;;  %v2246_v59 = vpack.c.bf16 %v1387_v55, %v1386_v40  ;;  %v1227_v60 = vmax.f32 %v741_v50, 0.0  ;;  %v743_v27 = vadd.f32 %v742_v53, %v2788_v33 }
 0x124   :  { %v1153_v61 = vmax.f32 %v794_v51, 0.0  ;;  %v1479_v8 = vmul.f32 %v2938_v56, %v1226_v52  ;;  %v1405_v62 = vmul.f32 %v2978_v42, %v1152_v25  ;;  %v796_v63 = vadd.f32 %v795_v58, %v2755_v14  ;;  %v744_v2 = vpop.f32.mrf.mxu0  ;;  %v797_v3 = vpop.f32.mrf.mxu1 }
 0x125   :  { %2027 = vst [vmem:[#allocation2 + $0x19c] sm:$0xff] %v2285_v37  ;;  %1988 = vst [vmem:[#allocation2 + $0x74] sm:$0xff] %v2246_v59  ;;  %v1480_v6 = vmul.f32 %v2942_v57, %v1227_v60  ;;  %v745_v4 = vadd.f32 %v744_v2, %v2788_v33  ;;  %v798_v9 = vadd.f32 %v797_v3, %v2755_v14  ;;  %v1245_v13 = vmax.f32 %v743_v27, 0.0 }
 0x126   :  { %v1406_v7 = vmul.f32 %v2983_v43, %v1153_v61  ;;  %v1171_v21 = vmax.f32 %v796_v63, 0.0  ;;  %v801_v22 = vpop.f32.mrf.mxu1  ;;  %v854_v34 = vpop.f32.mrf.mxu0  ;;  %v3025_v24 = vrot.slane %v2926_v54, %v1284_v1 }
 0x127   :  { %v2295_v26 = vpack.c.bf16 %v1480_v6, %v1479_v8  ;;  %v1246_v29 = vmax.f32 %v745_v4, 0.0  ;;  %v1172_v30 = vmax.f32 %v798_v9, 0.0  ;;  %v1498_v31 = vmul.f32 %v2938_v56, %v1245_v13 }
 0x128   :  { %v2256_v28 = vpack.c.bf16 %v1406_v7, %v1405_v62  ;;  %v1424_v20 = vmul.f32 %v2978_v42, %v1171_v21  ;;  %v802_v35 = vadd.f32 %v801_v22, %v2757_v15  ;;  %v855_v32 = vadd.f32 %v854_v34, %v2749_v10  ;;  %v803_v38 = vpop.f32.mrf.mxu1  ;;  %v856_v0 = vpop.f32.mrf.mxu0 }
 0x129   :  { %2037 = vst [vmem:[#allocation2 + $0x1e8] sm:$0xff] %v2295_v26  ;;  %v1499_v39 = vmul.f32 %v2942_v57, %v1246_v29  ;;  %v1425_v1 = vmul.f32 %v2983_v43, %v1172_v30  ;;  %v804_v40 = vadd.f32 %v803_v38, %v2757_v15  ;;  %v857_v41 = vadd.f32 %v856_v0, %v2749_v10 }
 0x12a   :  { %1998 = vst [vmem:[#allocation2 + $0xc0] sm:$0xff] %v2256_v28  ;;  %v1190_v44 = vmax.f32 %v802_v35, 0.0  ;;  %v1116_v56 = vmax.f32 %v855_v32, 0.0  ;;  %v805_v45 = vpop.f32.mrf.mxu1  ;;  %v858_v46 = vpop.f32.mrf.mxu0 }
 0x12b   :  { %v2305_v47 = vpack.c.bf16 %v1499_v39, %v1498_v31  ;;  %v2266_v55 = vpack.c.bf16 %v1425_v1, %v1424_v20  ;;  %v1191_v50 = vmax.f32 %v804_v40, 0.0  ;;  %v1117_v51 = vmax.f32 %v857_v41, 0.0 }
 0x12c   :  { %v1443_v52 = vmul.f32 %v2978_v42, %v1190_v44  ;;  %v1369_v25 = vmul.f32 %v3020_v23, %v1116_v56  ;;  %v806_v57 = vadd.f32 %v805_v45, %v2761_v17  ;;  %v859_v53 = vadd.f32 %v858_v46, %v2753_v12  ;;  %v807_v58 = vpop.f32.mrf.mxu1  ;;  %v860_v37 = vpop.f32.mrf.mxu0 }
 0x12d   :  { %2047 = vst [vmem:[#allocation2 + $0x234] sm:$0xff] %v2305_v47  ;;  %2008 = vst [vmem:[#allocation2 + $0x10c] sm:$0xff] %v2266_v55  ;;  %v1444_v59 = vmul.f32 %v2983_v43, %v1191_v50  ;;  %v1370_v60 = vmul.f32 %v3025_v24, %v1117_v51  ;;  %v808_v61 = vadd.f32 %v807_v58, %v2761_v17 }
 0x12e   :  { %v861_v8 = vadd.f32 %v860_v37, %v2753_v12  ;;  %v1209_v62 = vmax.f32 %v806_v57, 0.0  ;;  %v1135_v27 = vmax.f32 %v859_v53, 0.0  ;;  %v811_v63 = vpop.f32.mrf.mxu1  ;;  %v864_v2 = vpop.f32.mrf.mxu0  ;;  %v3062_v37 = vrot.slane %v2926_v54, %v1288_v48 }
 0x12f   :  { %v2276_v3 = vpack.c.bf16 %v1444_v59, %v1443_v52  ;;  %v2237_v6 = vpack.c.bf16 %v1370_v60, %v1369_v25  ;;  %v1210_v7 = vmax.f32 %v808_v61, 0.0  ;;  %v812_v21 = vadd.f32 %v811_v63, %v2766_v19 }
 0x130   :  { %v1136_v4 = vmax.f32 %v861_v8, 0.0  ;;  %v1462_v9 = vmul.f32 %v2978_v42, %v1209_v62  ;;  %v1388_v13 = vmul.f32 %v3020_v23, %v1135_v27  ;;  %v865_v22 = vadd.f32 %v864_v2, %v2751_v11  ;;  %v813_v34 = vpop.f32.mrf.mxu1  ;;  %v866_v26 = vpop.f32.mrf.mxu0 }
 0x131   :  { %2018 = vst [vmem:[#allocation2 + $0x158] sm:$0xff] %v2276_v3  ;;  %1979 = vst [vmem:[#allocation2 + $0x30] sm:$0xff] %v2237_v6  ;;  %v1463_v28 = vmul.f32 %v2983_v43, %v1210_v7  ;;  %v814_v30 = vadd.f32 %v813_v34, %v2766_v19  ;;  %v867_v31 = vadd.f32 %v866_v26, %v2751_v11  ;;  %v1228_v20 = vmax.f32 %v812_v21, 0.0 }
 0x132   :  { %v1389_v29 = vmul.f32 %v3025_v24, %v1136_v4  ;;  %v1154_v35 = vmax.f32 %v865_v22, 0.0  ;;  %v815_v32 = vpop.f32.mrf.mxu1  ;;  %v868_v38 = vpop.f32.mrf.mxu0  ;;  %v3067_v59 = vrot.slane %v2926_v54, %v1292_v49 }
 0x133   :  { %v2286_v0 = vpack.c.bf16 %v1463_v28, %v1462_v9  ;;  %v1229_v1 = vmax.f32 %v814_v30, 0.0  ;;  %v1155_v40 = vmax.f32 %v867_v31, 0.0  ;;  %v1481_v41 = vmul.f32 %v2978_v42, %v1228_v20 }
 0x134   :  { %v2247_v39 = vpack.c.bf16 %v1389_v29, %v1388_v13  ;;  %v1407_v44 = vmul.f32 %v3020_v23, %v1154_v35  ;;  %v816_v56 = vadd.f32 %v815_v32, %v2788_v33  ;;  %v869_v45 = vadd.f32 %v868_v38, %v2755_v14  ;;  %v817_v46 = vpop.f32.mrf.mxu1  ;;  %v870_v47 = vpop.f32.mrf.mxu0 }
 0x135   :  { %2028 = vst [vmem:[#allocation2 + $0x1a4] sm:$0xff] %v2286_v0  ;;  %v1482_v55 = vmul.f32 %v2983_v43, %v1229_v1  ;;  %v1408_v50 = vmul.f32 %v3025_v24, %v1155_v40  ;;  %v818_v51 = vadd.f32 %v817_v46, %v2788_v33  ;;  %v871_v52 = vadd.f32 %v870_v47, %v2755_v14 }
 0x136   :  { %1989 = vst [vmem:[#allocation2 + $0x7c] sm:$0xff] %v2247_v39  ;;  %v1247_v25 = vmax.f32 %v816_v56, 0.0  ;;  %v1173_v57 = vmax.f32 %v869_v45, 0.0  ;;  %v874_v53 = vpop.f32.mrf.mxu0  ;;  %v927_v58 = vpop.f32.mrf.mxu1 }
 0x137   :  { %v2296_v60 = vpack.c.bf16 %v1482_v55, %v1481_v41  ;;  %v2257_v61 = vpack.c.bf16 %v1408_v50, %v1407_v44  ;;  %v1248_v8 = vmax.f32 %v818_v51, 0.0  ;;  %v1174_v62 = vmax.f32 %v871_v52, 0.0 }
 0x138   :  { %v1500_v27 = vmul.f32 %v2978_v42, %v1247_v25  ;;  %v1426_v63 = vmul.f32 %v3020_v23, %v1173_v57  ;;  %v875_v2 = vadd.f32 %v874_v53, %v2757_v15  ;;  %v928_v3 = vadd.f32 %v927_v58, %v2749_v10  ;;  %v876_v6 = vpop.f32.mrf.mxu0  ;;  %v929_v48 = vpop.f32.mrf.mxu1 }
 0x139   :  { %2038 = vst [vmem:[#allocation2 + $0x1f0] sm:$0xff] %v2296_v60  ;;  %1999 = vst [vmem:[#allocation2 + $0xc8] sm:$0xff] %v2257_v61  ;;  %v1501_v5 = vmul.f32 %v2983_v43, %v1248_v8  ;;  %v1427_v49 = vmul.f32 %v3025_v24, %v1174_v62  ;;  %v877_v54 = vadd.f32 %v876_v6, %v2757_v15 }
 0x13a   :  { %v930_v7 = vadd.f32 %v929_v48, %v2749_v10  ;;  %v1192_v4 = vmax.f32 %v875_v2, 0.0  ;;  %v1118_v42 = vmax.f32 %v928_v3, 0.0  ;;  %v878_v9 = vpop.f32.mrf.mxu0  ;;  %v931_v13 = vpop.f32.mrf.mxu1  ;;  %v3096_v48 = vld [vmem:[%s3192_s3 + $0x10] sm:$0x7]  ;;  %s2424_s3 = smov [#allocation2]  }
 0x13b   :  { %v2306_v21 = vpack.c.bf16 %v1501_v5, %v1500_v27  ;;  %v2267_v22 = vpack.c.bf16 %v1427_v49, %v1426_v63  ;;  %v1193_v34 = vmax.f32 %v877_v54, 0.0  ;;  %v879_v43 = vadd.f32 %v878_v9, %v2761_v17  ;;  %s2058_s12 = sshll.u32 %s2424_s3, 4  ;;  %s2059_s12 = int_to_ptr.vmem [resolvable:$true] %s2058_s12 }
 0x13c   :  { %v1119_v26 = vmax.f32 %v930_v7, 0.0  ;;  %v1445_v28 = vmul.f32 %v3020_v23, %v1192_v4  ;;  %v1371_v29 = vmul.f32 %v3062_v37, %v1118_v42  ;;  %v932_v30 = vadd.f32 %v931_v13, %v2753_v12  ;;  %v880_v31 = vpop.f32.mrf.mxu0  ;;  %v933_v20 = vpop.f32.mrf.mxu1  ;;  %s2400_s13 = scalar_lea.vmem %s2059_s12, 9728  ;;  %p2405_p1 = scmp.lt.s32.totalorder %s2059_s12, %s2059_s12 }
 0x13d   :  { %2048 = vst [vmem:[#allocation2 + $0x23c] sm:$0xff] %v2306_v21  ;;  %2009 = vst [vmem:[#allocation2 + $0x114] sm:$0xff] %v2267_v22  ;;  %v1446_v35 = vmul.f32 %v3025_v24, %v1193_v34  ;;  %v881_v38 = vadd.f32 %v880_v31, %v2761_v17  ;;  %v934_v0 = vadd.f32 %v933_v20, %v2753_v12  ;;  %v1211_v39 = vmax.f32 %v879_v43, 0.0  ;;  %p2401_p0 = scmp.ne.s32.totalorder %s2059_s12, %s2400_s13  ;;  %p2406_p2 = scmp.lt.s32.totalorder %s2400_s13, %s2400_s13 }
 0x13e   :  { %v1372_v32 = vmul.f32 %v3067_v59, %v1119_v26  ;;  %v1137_v1 = vmax.f32 %v932_v30, 0.0  ;;  %v884_v40 = vpop.f32.mrf.mxu0  ;;  %v937_v41 = vpop.f32.mrf.mxu1  ;;  %v3108_v43 = vrot.slane %v3096_v48, %v2764_v18  ;;  %v3112_v30 = vrot.slane %v3096_v48, %v2769_v16 }
 0x13f   :  { %v2277_v44 = vpack.c.bf16 %v1446_v35, %v1445_v28  ;;  %v1212_v45 = vmax.f32 %v881_v38, 0.0  ;;  %v1138_v46 = vmax.f32 %v934_v0, 0.0  ;;  %v1464_v47 = vmul.f32 %v3020_v23, %v1211_v39  ;;  %p2407_p3 = por %p2406_p2, %p2405_p1 }
 0x140   :  { %v2238_v56 = vpack.c.bf16 %v1372_v32, %v1371_v29  ;;  %v1390_v55 = vmul.f32 %v3062_v37, %v1137_v1  ;;  %v885_v50 = vadd.f32 %v884_v40, %v2766_v19  ;;  %v938_v51 = vadd.f32 %v937_v41, %v2751_v11  ;;  %v886_v52 = vpop.f32.mrf.mxu0  ;;  %v939_v25 = vpop.f32.mrf.mxu1 }
 0x141   :  { %2019 = vst [vmem:[#allocation2 + $0x160] sm:$0xff] %v2277_v44  ;;  %v1465_v57 = vmul.f32 %v3025_v24, %v1212_v45  ;;  %v1391_v53 = vmul.f32 %v3067_v59, %v1138_v46  ;;  %v887_v58 = vadd.f32 %v886_v52, %v2766_v19  ;;  %v940_v60 = vadd.f32 %v939_v25, %v2751_v11  ;;  %p2408_p4 = pnand %p2407_p3, %p2401_p0 }
 0x142   :  { %1980 = vst [vmem:[#allocation2 + $0x38] sm:$0xff] %v2238_v56  ;;  %v1230_v61 = vmax.f32 %v885_v50, 0.0  ;;  %v1156_v8 = vmax.f32 %v938_v51, 0.0  ;;  %v888_v62 = vpop.f32.mrf.mxu0  ;;  %v941_v27 = vpop.f32.mrf.mxu1 }
 0x143   :  { %v2287_v63 = vpack.c.bf16 %v1465_v57, %v1464_v47  ;;  %v2248_v2 = vpack.c.bf16 %v1391_v53, %v1390_v55  ;;  %v1231_v3 = vmax.f32 %v887_v58, 0.0  ;;  %v1157_v6 = vmax.f32 %v940_v60, 0.0 }
 0x144   :  { %v1483_v5 = vmul.f32 %v3020_v23, %v1230_v61  ;;  %v1409_v49 = vmul.f32 %v3062_v37, %v1156_v8  ;;  %v889_v54 = vadd.f32 %v888_v62, %v2788_v33  ;;  %v942_v7 = vadd.f32 %v941_v27, %v2755_v14  ;;  %v890_v4 = vpop.f32.mrf.mxu0  ;;  %v943_v42 = vpop.f32.mrf.mxu1 }
 0x145   :  { %2029 = vst [vmem:[#allocation2 + $0x1ac] sm:$0xff] %v2287_v63  ;;  %1990 = vst [vmem:[#allocation2 + $0x84] sm:$0xff] %v2248_v2  ;;  %v1484_v9 = vmul.f32 %v3025_v24, %v1231_v3  ;;  %v1410_v13 = vmul.f32 %v3067_v59, %v1157_v6  ;;  %v891_v21 = vadd.f32 %v890_v4, %v2788_v33 }
 0x146   :  { %v944_v22 = vadd.f32 %v943_v42, %v2755_v14  ;;  %v1249_v34 = vmax.f32 %v889_v54, 0.0  ;;  %v1175_v26 = vmax.f32 %v942_v7, 0.0  ;;  %v947_v28 = vpop.f32.mrf.mxu1  ;;  %v1000_v29 = vpop.f32.mrf.mxu0 }
 0x147   :  { %v2297_v31 = vpack.c.bf16 %v1484_v9, %v1483_v5  ;;  %v2258_v20 = vpack.c.bf16 %v1410_v13, %v1409_v49  ;;  %v1250_v35 = vmax.f32 %v891_v21, 0.0  ;;  %v948_v39 = vadd.f32 %v947_v28, %v2757_v15 }
 0x148   :  { %v1176_v32 = vmax.f32 %v944_v22, 0.0  ;;  %v1502_v38 = vmul.f32 %v3020_v23, %v1249_v34  ;;  %v1428_v0 = vmul.f32 %v3062_v37, %v1175_v26  ;;  %v1001_v1 = vadd.f32 %v1000_v29, %v2749_v10  ;;  %v949_v40 = vpop.f32.mrf.mxu1  ;;  %v1002_v41 = vpop.f32.mrf.mxu0 }
 0x149   :  { %2039 = vst [vmem:[#allocation2 + $0x1f8] sm:$0xff] %v2297_v31  ;;  %2000 = vst [vmem:[#allocation2 + $0xd0] sm:$0xff] %v2258_v20  ;;  %v1503_v18 = vmul.f32 %v3025_v24, %v1250_v35  ;;  %v950_v44 = vadd.f32 %v949_v40, %v2757_v15  ;;  %v1003_v56 = vadd.f32 %v1002_v41, %v2749_v10  ;;  %v1194_v45 = vmax.f32 %v948_v39, 0.0 }
 0x14a   :  { %v1429_v16 = vmul.f32 %v3067_v59, %v1176_v32  ;;  %v1120_v23 = vmax.f32 %v1001_v1, 0.0  ;;  %v951_v46 = vpop.f32.mrf.mxu1  ;;  %v1004_v47 = vpop.f32.mrf.mxu0 }
 0x14b   :  { %v2307_v55 = vpack.c.bf16 %v1503_v18, %v1502_v38  ;;  %v1195_v51 = vmax.f32 %v950_v44, 0.0  ;;  %v1121_v52 = vmax.f32 %v1003_v56, 0.0  ;;  %v1447_v25 = vmul.f32 %v3062_v37, %v1194_v45 }
 0x14c   :  { %v2268_v50 = vpack.c.bf16 %v1429_v16, %v1428_v0  ;;  %v1373_v57 = vmul.f32 %v3108_v43, %v1120_v23  ;;  %v952_v24 = vadd.f32 %v951_v46, %v2761_v17  ;;  %v1005_v53 = vadd.f32 %v1004_v47, %v2753_v12  ;;  %v953_v58 = vpop.f32.mrf.mxu1  ;;  %v1006_v60 = vpop.f32.mrf.mxu0 }
 0x14d   :  { %2049 = vst [vmem:[#allocation2 + $0x244] sm:$0xff] %v2307_v55  ;;  %v1448_v61 = vmul.f32 %v3067_v59, %v1195_v51  ;;  %v1374_v8 = vmul.f32 %v3112_v30, %v1121_v52  ;;  %v954_v62 = vadd.f32 %v953_v58, %v2761_v17  ;;  %v1007_v27 = vadd.f32 %v1006_v60, %v2753_v12 }
 0x14e   :  { %2010 = vst [vmem:[#allocation2 + $0x11c] sm:$0xff] %v2268_v50  ;;  %v1213_v63 = vmax.f32 %v952_v24, 0.0  ;;  %v1139_v2 = vmax.f32 %v1005_v53, 0.0  ;;  %v957_v3 = vpop.f32.mrf.mxu1  ;;  %v1010_v6 = vpop.f32.mrf.mxu0 }
 0x14f   :  { %v2278_v5 = vpack.c.bf16 %v1448_v61, %v1447_v25  ;;  %v2239_v49 = vpack.c.bf16 %v1374_v8, %v1373_v57  ;;  %v1214_v54 = vmax.f32 %v954_v62, 0.0  ;;  %v1140_v7 = vmax.f32 %v1007_v27, 0.0 }
 0x150   :  { %v1466_v4 = vmul.f32 %v3062_v37, %v1213_v63  ;;  %v1392_v42 = vmul.f32 %v3108_v43, %v1139_v2  ;;  %v958_v9 = vadd.f32 %v957_v3, %v2766_v19  ;;  %v1011_v13 = vadd.f32 %v1010_v6, %v2751_v11  ;;  %v959_v21 = vpop.f32.mrf.mxu1  ;;  %v1012_v22 = vpop.f32.mrf.mxu0 }
 0x151   :  { %2020 = vst [vmem:[#allocation2 + $0x168] sm:$0xff] %v2278_v5  ;;  %1981 = vst [vmem:[#allocation2 + $0x40] sm:$0xff] %v2239_v49  ;;  %v1467_v34 = vmul.f32 %v3067_v59, %v1214_v54  ;;  %v1393_v26 = vmul.f32 %v3112_v30, %v1140_v7  ;;  %v960_v28 = vadd.f32 %v959_v21, %v2766_v19 }
 0x152   :  { %v1013_v29 = vadd.f32 %v1012_v22, %v2751_v11  ;;  %v1232_v31 = vmax.f32 %v958_v9, 0.0  ;;  %v1158_v20 = vmax.f32 %v1011_v13, 0.0  ;;  %v961_v35 = vpop.f32.mrf.mxu1  ;;  %v1014_v32 = vpop.f32.mrf.mxu0  ;;  %v3148_v25 = vrot.slane %v3096_v48, %v2791_v36 }
 0x153   :  { %v2288_v38 = vpack.c.bf16 %v1467_v34, %v1466_v4  ;;  %v2249_v0 = vpack.c.bf16 %v1393_v26, %v1392_v42  ;;  %v1233_v39 = vmax.f32 %v960_v28, 0.0  ;;  %v962_v18 = vadd.f32 %v961_v35, %v2788_v33 }
 0x154   :  { %v1159_v1 = vmax.f32 %v1013_v29, 0.0  ;;  %v1485_v40 = vmul.f32 %v3062_v37, %v1232_v31  ;;  %v1411_v41 = vmul.f32 %v3108_v43, %v1158_v20  ;;  %v1015_v16 = vadd.f32 %v1014_v32, %v2755_v14  ;;  %v963_v44 = vpop.f32.mrf.mxu1  ;;  %v1016_v56 = vpop.f32.mrf.mxu0 }
 0x155   :  { %2030 = vst [vmem:[#allocation2 + $0x1b4] sm:$0xff] %v2288_v38  ;;  %1991 = vst [vmem:[#allocation2 + $0x8c] sm:$0xff] %v2249_v0  ;;  %v1486_v45 = vmul.f32 %v3067_v59, %v1233_v39  ;;  %v964_v46 = vadd.f32 %v963_v44, %v2788_v33  ;;  %v1017_v47 = vadd.f32 %v1016_v56, %v2755_v14  ;;  %v1251_v55 = vmax.f32 %v962_v18, 0.0 }
 0x156   :  { %v1412_v23 = vmul.f32 %v3112_v30, %v1159_v1  ;;  %v1177_v50 = vmax.f32 %v1015_v16, 0.0  ;;  %v1020_v51 = vpop.f32.mrf.mxu0  ;;  %v2323_v52 = vpop.f32.mrf.mxu1 }
 0x157   :  { %v2298_v57 = vpack.c.bf16 %v1486_v45, %v1485_v40  ;;  %v1252_v53 = vmax.f32 %v964_v46, 0.0  ;;  %v1178_v58 = vmax.f32 %v1017_v47, 0.0  ;;  %v1504_v60 = vmul.f32 %v3062_v37, %v1251_v55 }
 0x158   :  { %v2259_v24 = vpack.c.bf16 %v1412_v23, %v1411_v41  ;;  %v1430_v61 = vmul.f32 %v3108_v43, %v1177_v50  ;;  %v1021_v8 = vadd.f32 %v1020_v51, %v2757_v15  ;;  %v1082_v62 = vadd.f32 %v2323_v52, %v2751_v11  ;;  %v1022_v27 = vpop.f32.mrf.mxu0  ;;  %v1073_v63 = vpop.f32.mrf.mxu1 }
 0x159   :  { %2040 = vst [vmem:[#allocation2 + $0x200] sm:$0xff] %v2298_v57  ;;  %v1505_v2 = vmul.f32 %v3067_v59, %v1252_v53  ;;  %v1431_v36 = vmul.f32 %v3112_v30, %v1178_v58  ;;  %v1023_v48 = vadd.f32 %v1022_v27, %v2757_v15  ;;  %v1074_v3 = vadd.f32 %v1073_v63, %v2749_v10 }
 0x15a   :  { %2001 = vst [vmem:[#allocation2 + $0xd8] sm:$0xff] %v2259_v24  ;;  %v1196_v6 = vmax.f32 %v1021_v8, 0.0  ;;  %v1160_v37 = vmax.f32 %v1082_v62, 0.0  ;;  %v1024_v5 = vpop.f32.mrf.mxu0  ;;  %v2324_v49 = vpop.f32.mrf.mxu1 }
 0x15b   :  { %v2308_v54 = vpack.c.bf16 %v1505_v2, %v1504_v60  ;;  %v2269_v7 = vpack.c.bf16 %v1431_v36, %v1430_v61  ;;  %v1197_v4 = vmax.f32 %v1023_v48, 0.0  ;;  %v1122_v11 = vmax.f32 %v1074_v3, 0.0 }
 0x15c   :  { %v1449_v42 = vmul.f32 %v3108_v43, %v1196_v6  ;;  %v1413_v9 = vmul.f32 %v3148_v25, %v1160_v37  ;;  %v1025_v59 = vadd.f32 %v1024_v5, %v2761_v17  ;;  %v1085_v13 = vadd.f32 %v2324_v49, %v2755_v14  ;;  %v1026_v21 = vpop.f32.mrf.mxu0  ;;  %v1076_v22 = vpop.f32.mrf.mxu1 }
 0x15d   :  { %2050 = vst [vmem:[#allocation2 + $0x24c] sm:$0xff] %v2308_v54  ;;  %2011 = vst [vmem:[#allocation2 + $0x124] sm:$0xff] %v2269_v7  ;;  %v1450_v10 = vmul.f32 %v3112_v30, %v1197_v4  ;;  %v1375_v34 = vmul.f32 %v3148_v25, %v1122_v11  ;;  %v1027_v26 = vadd.f32 %v1026_v21, %v2761_v17 }
 0x15e   :  { %v1077_v28 = vadd.f32 %v1076_v22, %v2753_v12  ;;  %v2260_v29 = vpack.c.bf16 %v1413_v9, %v1413_v9  ;;  %v1215_v31 = vmax.f32 %v1025_v59, 0.0  ;;  %v1179_v20 = vmax.f32 %v1085_v13, 0.0  ;;  %v1030_v35 = vpop.f32.mrf.mxu0  ;;  %v2327_v32 = vpop.f32.mrf.mxu1 }
 0x15f   :  { %v2279_v38 = vpack.c.bf16 %v1450_v10, %v1449_v42  ;;  %v2240_v0 = vpack.c.bf16 %v1375_v34, %v1375_v34  ;;  %v1216_v14 = vmax.f32 %v1027_v26, 0.0  ;;  %v1031_v41 = vadd.f32 %v1030_v35, %v2766_v19 }
 0x160   :  { %v1141_v39 = vmax.f32 %v1077_v28, 0.0  ;;  %2002 = vst [vmem:[#allocation2 + $0xe0] sm:$0xf] %v2260_v29  ;;  %v1468_v1 = vmul.f32 %v3108_v43, %v1215_v31  ;;  %v1432_v40 = vmul.f32 %v3148_v25, %v1179_v20  ;;  %v1098_v18 = vadd.f32 %v2327_v32, %v2766_v19  ;;  %v1032_v16 = vpop.f32.mrf.mxu0  ;;  %v1089_v12 = vpop.f32.mrf.mxu1 }
 0x161   :  { %2021 = vst [vmem:[#allocation2 + $0x170] sm:$0xff] %v2279_v38  ;;  %1982 = vst [vmem:[#allocation2 + $0x48] sm:$0xf] %v2240_v0  ;;  %v1469_v44 = vmul.f32 %v3112_v30, %v1216_v14  ;;  %v1033_v45 = vadd.f32 %v1032_v16, %v2766_v19  ;;  %v1090_v23 = vadd.f32 %v1089_v12, %v2757_v15  ;;  %v1234_v47 = vmax.f32 %v1031_v41, 0.0 }
 0x162   :  { %v1394_v56 = vmul.f32 %v3148_v25, %v1141_v39  ;;  %v2270_v46 = vpack.c.bf16 %v1432_v40, %v1432_v40  ;;  %v1236_v55 = vmax.f32 %v1098_v18, 0.0  ;;  %v1034_v50 = vpop.f32.mrf.mxu0  ;;  %v2328_v51 = vpop.f32.mrf.mxu1 }
 0x163   :  { %v2289_v52 = vpack.c.bf16 %v1469_v44, %v1468_v1  ;;  %v1235_v24 = vmax.f32 %v1033_v45, 0.0  ;;  %v1198_v53 = vmax.f32 %v1090_v23, 0.0  ;;  %v1487_v58 = vmul.f32 %v3108_v43, %v1234_v47 }
 0x164   :  { %v2250_v57 = vpack.c.bf16 %v1394_v56, %v1394_v56  ;;  %2012 = vst [vmem:[#allocation2 + $0x12c] sm:$0xf] %v2270_v46  ;;  %v1489_v60 = vmul.f32 %v3148_v25, %v1236_v55  ;;  %v1035_v61 = vadd.f32 %v1034_v50, %v2788_v33  ;;  %v1101_v19 = vadd.f32 %v2328_v51, %v2788_v33  ;;  %v1036_v8 = vpop.f32.mrf.mxu0  ;;  %v1092_v15 = vpop.f32.mrf.mxu1 }
 0x165   :  { %2031 = vst [vmem:[#allocation2 + $0x1bc] sm:$0xff] %v2289_v52  ;;  %v1488_v62 = vmul.f32 %v3112_v30, %v1235_v24  ;;  %v1451_v27 = vmul.f32 %v3148_v25, %v1198_v53  ;;  %v1037_v63 = vadd.f32 %v1036_v8, %v2788_v33  ;;  %v1093_v2 = vadd.f32 %v1092_v15, %v2761_v17 }
 0x166   :  { %1992 = vst [vmem:[#allocation2 + $0x94] sm:$0xf] %v2250_v57  ;;  %v2300_v36 = vpack.c.bf16 %v1489_v60, %v1489_v60  ;;  %v1253_v48 = vmax.f32 %v1035_v61, 0.0  ;;  %v1255_v3 = vmax.f32 %v1101_v19, 0.0 }
 0x167   :  { %v2299_v6 = vpack.c.bf16 %v1488_v62, %v1487_v58  ;;  %v2280_v37 = vpack.c.bf16 %v1451_v27, %v1451_v27  ;;  %v1254_v5 = vmax.f32 %v1037_v63, 0.0  ;;  %v1217_v49 = vmax.f32 %v1093_v2, 0.0 }
 0x168   :  { %2042 = vst [vmem:[#allocation2 + $0x210] sm:$0xf] %v2300_v36  ;;  %v1508_v54 = vmul.f32 %v3148_v25, %v1255_v3  ;;  %v1506_v7 = vmul.f32 %v3108_v43, %v1253_v48 }
 0x169   :  { %2041 = vst [vmem:[#allocation2 + $0x208] sm:$0xff] %v2299_v6  ;;  %2022 = vst [vmem:[#allocation2 + $0x178] sm:$0xf] %v2280_v37  ;;  %v1507_v33 = vmul.f32 %v3112_v30, %v1254_v5  ;;  %v1470_v17 = vmul.f32 %v3148_v25, %v1217_v49 }
 0x16a   :  { %v2310_v4 = vpack.c.bf16 %v1508_v54, %v1508_v54 }
 0x16b   :  { %v2309_v11 = vpack.c.bf16 %v1507_v33, %v1506_v7  ;;  %v2290_v42 = vpack.c.bf16 %v1470_v17, %v1470_v17 }
 0x16c   :  { %2052 = vst [vmem:[#allocation2 + $0x25c] sm:$0xf] %v2310_v4 }
 0x16d   :  { %2051 = vst [vmem:[#allocation2 + $0x254] sm:$0xff] %v2309_v11  ;;  %2032 = vst [vmem:[#allocation2 + $0x1c4] sm:$0xf] %v2290_v42 }
 0x16e   :  { %2411 = shalt.err (!%p2408_p4)
}
 0x16f   :  { %s2425_s14 = smov 1216   ;;  %s2426_s15 = smov 76  }
 0x170   :  { %2064 = dma.vmem_to_hbm [thread:$0]  %s2059_s12, 9728, %s3193_s4, [#allocation3], %s2425_s14, %s2425_s14, %s2426_s15  }
 0x171   :  { %2420 = dma.done.wait [#allocation3], 9728  }
 0x172   :  { %2421 = vsyncadd [#allocation3], 4294957568 }
 0x173   :  { %2068 = vsyncpa [#allocation3], 1 }

</bundles_post_ra>
